<compile_context>
chip_gen: v6e
topology: v6e:2x2x1
jax: 0.10.0
libtpu: 0.0.40
codegen_flags: <defaults>
</compile_context>

<pallas_src>
import jax
import jax.numpy as jnp
from jax.experimental import pallas as pl
from jax.experimental.pallas import tpu as pltpu

# ----------------------------- problem sizes --------------------------------
B = 2
IN_F, MID_F, OUT_F = 8, 32, 16
H0 = W0 = 16                  # SKUnit input spatial size
HP, WP = H0 // 2, W0 // 2     # after the 2x2 avg-pool -> 8x8
M = 2                         # SK branches (dilations 1 and 2)
G = 32                        # conv groups; G == MID_F -> depthwise
R, L = 16, 32
D = max(MID_F // R, L)        # 32
PAD = 2                       # shared halo = max dilation

assert MID_F == G, "kernels specialize the grouped conv to the depthwise case"


# ------------------------- kernel A: conv1 + pool ----------------------------
def _conv1_pool_kernel(x_ref, w_ref, b_ref, pool_ref, o_ref):
    # x_ref: (1, H0, W0, IN_F).  conv1 is 1x1 -> one matmul over all pixels.
    x = x_ref[0].reshape(H0 * W0, IN_F)                                # (256, 8)
    y = jnp.dot(x, w_ref[...], preferred_element_type=jnp.float32)     # (256, C)
    y = jnp.maximum(y + b_ref[...], 0.0)                               # folded BN + ReLU
    # 2x2 average pool as a constant (64, 256) matmul (stays on the MXU).
    o_ref[0] = jnp.dot(pool_ref[...], y, preferred_element_type=jnp.float32)


def conv1_bn_relu_pool(x_nhwc, w1, b1, pool2):
    return pl.pallas_call(
        _conv1_pool_kernel,
        out_shape=jax.ShapeDtypeStruct((B, HP * WP, MID_F), jnp.float32),
        grid=(B,),
        in_specs=[
            pl.BlockSpec((1, H0, W0, IN_F), lambda i: (i, 0, 0, 0)),
            pl.BlockSpec((IN_F, MID_F), lambda i: (0, 0)),
            pl.BlockSpec((1, MID_F), lambda i: (0, 0)),
            pl.BlockSpec((HP * WP, H0 * W0), lambda i: (0, 0)),
        ],
        out_specs=pl.BlockSpec((1, HP * WP, MID_F), lambda i: (i, 0, 0)),
        compiler_params=pltpu.CompilerParams(dimension_semantics=("parallel",)),
    )(x_nhwc, w1, b1, pool2)


# --------------- kernel B: whole SKConv (+ folded conv3) per batch -----------
def _skconv_kernel(xp_ref, wdw_ref, bdw_ref, fcw_ref, fcb_ref, attw_ref,
                   attb_ref, grp_ref, exp_ref, poolw_ref, wf_ref, bf_ref, o_ref):
    HW, C = HP * WP, MID_F

    # --- two depthwise dilated 3x3 branches (+folded BN, ReLU): pure VPU FMAs ---
    feats = []
    for m in range(M):
        dil = 1 + m
        off = PAD - dil
        acc = jnp.zeros((HW, C), jnp.float32)
        for t in range(9):
            dy, dx = t // 3, t % 3
            y0, x0 = off + dy * dil, off + dx * dil
            patch = xp_ref[0, y0:y0 + HP, x0:x0 + WP, :]               # (8, 8, C)
            acc = acc + patch.reshape(HW, C) * wdw_ref[m * 9 + t:m * 9 + t + 1, :]
        feats.append(jnp.maximum(acc + bdw_ref[m:m + 1, :], 0.0))
    f0, f1 = feats                                                     # (64, C) each
    fu = f0 + f1

    # --- channel (SE) attention: GAP -> fc(+BN,ReLU) -> both fcs in one matmul ---
    gap = jnp.sum(fu, axis=0, keepdims=True) * (1.0 / HW)              # (1, C)
    z = jnp.dot(gap, fcw_ref[...], preferred_element_type=jnp.float32) + fcb_ref[...]
    z = jnp.maximum(z, 0.0)                                            # (1, D)
    att = jnp.dot(z, attw_ref[...], preferred_element_type=jnp.float32) + attb_ref[...]
    a0, a1 = att[:, :C], att[:, C:]                                    # (1, C) each
    amx = jnp.maximum(a0, a1)
    e0, e1 = jnp.exp(a0 - amx), jnp.exp(a1 - amx)
    den = e0 + e1
    ac0, ac1 = e0 / den, e1 / den

    # --- frequency attention: per-row mean over (W, C), softmax over branches ---
    rs0 = jnp.dot(grp_ref[...], f0, preferred_element_type=jnp.float32)   # (H, C)
    rs1 = jnp.dot(grp_ref[...], f1, preferred_element_type=jnp.float32)
    r0 = jnp.sum(rs0, axis=1, keepdims=True) * (1.0 / WP)              # (H, 1)
    r1 = jnp.sum(rs1, axis=1, keepdims=True) * (1.0 / WP)
    rmx = jnp.maximum(r0, r1)
    g0, g1 = jnp.exp(r0 - rmx), jnp.exp(r1 - rmx)
    gden = g0 + g1
    af0 = jnp.dot(exp_ref[...], jnp.broadcast_to(g0 / gden, (HP, C)),
                  preferred_element_type=jnp.float32)                  # (HW, C)
    af1 = jnp.dot(exp_ref[...], jnp.broadcast_to(g1 / gden, (HP, C)),
                  preferred_element_type=jnp.float32)

    ch = f0 * ac0 + f1 * ac1                                           # channel-attended
    fr = f0 * af0 + f1 * af1                                           # frequency-attended

    # --- width (1,2) avg-pool (matmul) + folded sk_norm/unit_norm/conv3/bn3 ---
    chp = jnp.dot(poolw_ref[...], ch, preferred_element_type=jnp.float32)  # (HW//2, C)
    frp = jnp.dot(poolw_ref[...], fr, preferred_element_type=jnp.float32)
    o_ref[0, 0] = jnp.dot(chp, wf_ref[...], preferred_element_type=jnp.float32) + bf_ref[...]
    o_ref[0, 1] = jnp.dot(frp, wf_ref[...], preferred_element_type=jnp.float32) + bf_ref[...]


def skconv_fused(xpad, wdw, bdw, fcw, fcb, attw, attb, grp, expm, poolw, wf, bf):
    hpad, wpad = HP + 2 * PAD, WP + 2 * PAD
    return pl.pallas_call(
        _skconv_kernel,
        out_shape=jax.ShapeDtypeStruct((B, 2, HP * WP // 2, OUT_F), jnp.float32),
        grid=(B,),
        in_specs=[
            pl.BlockSpec((1, hpad, wpad, MID_F), lambda i: (i, 0, 0, 0)),
            pl.BlockSpec((M * 9, MID_F), lambda i: (0, 0)),
            pl.BlockSpec((M, MID_F), lambda i: (0, 0)),
            pl.BlockSpec((MID_F, D), lambda i: (0, 0)),
            pl.BlockSpec((1, D), lambda i: (0, 0)),
            pl.BlockSpec((D, M * MID_F), lambda i: (0, 0)),
            pl.BlockSpec((1, M * MID_F), lambda i: (0, 0)),
            pl.BlockSpec((HP, HP * WP), lambda i: (0, 0)),
            pl.BlockSpec((HP * WP, HP), lambda i: (0, 0)),
            pl.BlockSpec((HP * WP // 2, HP * WP), lambda i: (0, 0)),
            pl.BlockSpec((MID_F, OUT_F), lambda i: (0, 0)),
            pl.BlockSpec((1, OUT_F), lambda i: (0, 0)),
        ],
        out_specs=pl.BlockSpec((1, 2, HP * WP // 2, OUT_F), lambda i: (i, 0, 0, 0)),
        compiler_params=pltpu.CompilerParams(dimension_semantics=("parallel",)),
    )(xpad, wdw, bdw, fcw, fcb, attw, attb, grp, expm, poolw, wf, bf)


# ----------------------------- parameter setup -------------------------------
def init_params(key):
    ks = iter(jax.random.split(key, 64))

    def nrm(shape, s=0.1):
        return s * jax.random.normal(next(ks), shape, jnp.float32)

    def bn(c):
        return dict(gamma=1.0 + nrm((c,)), beta=nrm((c,)), mean=nrm((c,)),
                    var=1.0 + 0.5 * jax.random.uniform(next(ks), (c,), jnp.float32))

    p = {}
    p["conv1_w"] = nrm((IN_F, MID_F))                       # [Cin, Cout]
    p["bn1"] = bn(MID_F)
    p["branches"] = [dict(w=nrm((MID_F, MID_F // G, 3, 3)), bn=bn(MID_F))
                     for _ in range(M)]
    p["fc_w"] = nrm((MID_F, D))
    p["bn_fc"] = bn(D)
    p["fcs"] = [dict(w=nrm((D, MID_F)), b=nrm((MID_F,))) for _ in range(M)]
    p["sk_norm"] = bn(MID_F)
    p["unit_norm"] = bn(MID_F)
    p["conv3_w"] = nrm((MID_F, OUT_F))
    p["bn3"] = bn(OUT_F)
    return p


def bn_fold(bnp, eps=1e-5):
    scale = bnp["gamma"] / jnp.sqrt(bnp["var"] + eps)
    shift = bnp["beta"] - bnp["mean"] * scale
    return scale, shift


def fold_params(p):
    # conv1 + bn1: fold BN scale into the 1x1 weight.
    s1, t1 = bn_fold(p["bn1"])
    w1 = p["conv1_w"] * s1[None, :]
    b1 = t1.reshape(1, MID_F)

    # Depthwise branch taps (G == MID_F): [9, C] per branch, BN scale folded in.
    wdw, bdw = [], []
    for br in p["branches"]:
        s, t = bn_fold(br["bn"])
        taps = jnp.transpose(br["w"][:, 0], (1, 2, 0)).reshape(9, MID_F)   # [tap, C]
        wdw.append(taps * s[None, :])
        bdw.append(t)
    wdw = jnp.concatenate(wdw, axis=0)          # (M*9, C)
    bdw = jnp.stack(bdw, axis=0)                # (M, C)

    # fc (+bn_fc) fold.
    sf, tf_ = bn_fold(p["bn_fc"])
    fcw = p["fc_w"] * sf[None, :]
    fcb = tf_.reshape(1, D)

    # Both SK fcs collapsed into a single (D, M*C) matmul.
    attw = jnp.concatenate([p["fcs"][m]["w"] for m in range(M)], axis=1)
    attb = jnp.concatenate([p["fcs"][m]["b"] for m in range(M)]).reshape(1, M * MID_F)

    # sk_norm -> unit_norm -> conv3 -> bn3 folded into one (C, OUT_F) affine.
    # Valid because the ChannelTransformer is identity and the (1,2) avg-pool
    # commutes with per-channel affines.
    sks, skt = bn_fold(p["sk_norm"])
    us, ut = bn_fold(p["unit_norm"])
    s3, t3 = bn_fold(p["bn3"])
    a = sks * us
    c = skt * us + ut
    wf = (a[:, None] * p["conv3_w"]) * s3[None, :]
    bf = ((c @ p["conv3_w"]) * s3 + t3).reshape(1, OUT_F)
    return w1, b1, wdw, bdw, fcw, fcb, attw, attb, wf, bf


# --------------------------- constant pooling matrices ------------------------
def pool2x2_matrix():
    po, qi = jnp.arange(HP * WP), jnp.arange(H0 * W0)
    ph, pw = po // WP, po % WP
    qh, qw = qi // W0, qi % W0
    return jnp.where((qh[None, :] // 2 == ph[:, None]) &
                     (qw[None, :] // 2 == pw[:, None]), 0.25, 0.0).astype(jnp.float32)


def poolw2_matrix():
    po, qi = jnp.arange(HP * (WP // 2)), jnp.arange(HP * WP)
    ph, pw = po // (WP // 2), po % (WP // 2)
    qh, qw = qi // WP, qi % WP
    return jnp.where((qh[None, :] == ph[:, None]) &
                     (qw[None, :] // 2 == pw[:, None]), 0.5, 0.0).astype(jnp.float32)


def freq_matrices():
    q, h = jnp.arange(HP * WP), jnp.arange(HP)
    grp = (q[None, :] // WP == h[:, None]).astype(jnp.float32)   # (H, HW)
    return grp, grp.T                                            # and (HW, H)


# ----------------------------- forward pass -----------------------------------
def sk_unit_forward(x_nchw, p):
    x = jnp.transpose(x_nchw, (0, 2, 3, 1)).astype(jnp.float32)       # NCHW -> NHWC
    w1, b1, wdw, bdw, fcw, fcb, attw, attb, wf, bf = fold_params(p)

    # conv1 (1x1) + BN + ReLU + 2x2 avg-pool (Pallas kernel A).
    pooled = conv1_bn_relu_pool(x, w1, b1, pool2x2_matrix())           # (B, 64, C)
    pooled = pooled.reshape(B, HP, WP, MID_F)
    # Single shared halo for both dilations (pad once with the max dilation).
    xpad = jnp.pad(pooled, ((0, 0), (PAD, PAD), (PAD, PAD), (0, 0)))

    # Entire SKConv + folded unit_norm/conv3/bn3 (Pallas kernel B).
    grp, expm = freq_matrices()
    y = skconv_fused(xpad, wdw, bdw, fcw, fcb, attw, attb,
                     grp, expm, poolw2_matrix(), wf, bf)               # (B, 2, HW/2, OUT_F)

    # Reassemble [pooled-channel | pooled-frequency] along width; back to NCHW.
    y = y.reshape(B, 2, HP, WP // 2, OUT_F)
    y = jnp.transpose(y, (0, 2, 1, 3, 4)).reshape(B, HP, WP, OUT_F)
    return jnp.transpose(y, (0, 3, 1, 2))

# TODO(synk): ChannelTransformer (self.tf) is not defined in the reference source;
# it is applied as identity here (feats_V, weight = feats_V, None).


# ----------------------------------- main --------------------------------------
if __name__ == "__main__":
    key = jax.random.PRNGKey(0)
    pkey, xkey = jax.random.split(key)
    params = init_params(pkey)
    x = jax.random.normal(xkey, (B, IN_F, H0, W0), jnp.float32)

    fwd = jax.jit(sk_unit_forward)
    out = jax.block_until_ready(fwd(x, params))

    assert out.shape == (B, OUT_F, HP, WP), out.shape
    assert bool(jnp.all(jnp.isfinite(out)))
    print("KERNEL_OK")
</pallas_src>

<mosaic_0001>
module attributes {stable_mosaic.version = 11 : i64} {
  func.func @_conv1_pool_kernel(%arg0: i32, %arg1: memref<1x16x16x8xf32, #tpu.memory_space<vmem>>, %arg2: memref<8x32xf32, #tpu.memory_space<vmem>>, %arg3: memref<1x32xf32, #tpu.memory_space<vmem>>, %arg4: memref<64x256xf32, #tpu.memory_space<vmem>>, %arg5: memref<1x64x32xf32, #tpu.memory_space<vmem>>) attributes {dimension_semantics = [#tpu.dimension_semantics<parallel>], iteration_bounds = array<i64: 2>, scalar_prefetch = 0 : i64, scratch_operands = 0 : i64, tpu.core_type = #tpu.core_type<tc>, window_params = [{transform_indices = @transform_0, window_bounds = array<i64: 1, 16, 16, 8>}, {pipeline_mode = #tpu.pipeline_mode<synchronous>, transform_indices = @transform_1, window_bounds = array<i64: 8, 32>}, {pipeline_mode = #tpu.pipeline_mode<synchronous>, transform_indices = @transform_2, window_bounds = array<i64: 1, 32>}, {pipeline_mode = #tpu.pipeline_mode<synchronous>, transform_indices = @transform_3, window_bounds = array<i64: 64, 256>}, {transform_indices = @transform_4, window_bounds = array<i64: 1, 64, 32>}]} {
    %c0 = arith.constant 0 : index
    %c0_0 = arith.constant 0 : index
    %c0_1 = arith.constant 0 : index
    %c0_2 = arith.constant 0 : index
    %0 = vector.load %arg1[%c0, %c0_0, %c0_1, %c0_2] : memref<1x16x16x8xf32, #tpu.memory_space<vmem>>, vector<1x16x16x8xf32>
    %1 = vector.shape_cast %0 : vector<1x16x16x8xf32> to vector<16x16x8xf32>
    %2 = vector.shape_cast %1 : vector<16x16x8xf32> to vector<256x8xf32>
    %c0_3 = arith.constant 0 : index
    %c0_4 = arith.constant 0 : index
    %3 = vector.load %arg2[%c0_3, %c0_4] : memref<8x32xf32, #tpu.memory_space<vmem>>, vector<8x32xf32>
    %cst = arith.constant dense<0.000000e+00> : vector<256x32xf32>
    %4 = tpu.matmul %2, %3, %cst {dimension_numbers = #tpu.dot_dimension_numbers<[1], [0], [0], [1], [0, 0, 1, 1], [], []>} : vector<256x8xf32>, vector<8x32xf32>, vector<256x32xf32> -> vector<256x32xf32>
    %c0_5 = arith.constant 0 : index
    %c0_6 = arith.constant 0 : index
    %5 = vector.load %arg3[%c0_5, %c0_6] : memref<1x32xf32, #tpu.memory_space<vmem>>, vector<1x32xf32>
    %6 = vector.broadcast %5 : vector<1x32xf32> to vector<256x32xf32>
    %7 = arith.addf %4, %6 : vector<256x32xf32>
    %cst_7 = arith.constant 0.000000e+00 : f32
    %8 = vector.broadcast %cst_7 : f32 to vector<256x32xf32>
    %9 = arith.maximumf %7, %8 : vector<256x32xf32>
    %c0_8 = arith.constant 0 : index
    %c0_9 = arith.constant 0 : index
    %10 = vector.load %arg4[%c0_8, %c0_9] : memref<64x256xf32, #tpu.memory_space<vmem>>, vector<64x256xf32>
    %cst_10 = arith.constant dense<0.000000e+00> : vector<64x32xf32>
    %11 = tpu.matmul %10, %9, %cst_10 {dimension_numbers = #tpu.dot_dimension_numbers<[1], [0], [0], [1], [0, 0, 1, 1], [], []>} : vector<64x256xf32>, vector<256x32xf32>, vector<64x32xf32> -> vector<64x32xf32>
    %c0_11 = arith.constant 0 : index
    %c0_12 = arith.constant 0 : index
    %c0_13 = arith.constant 0 : index
    %12 = vector.load %arg5[%c0_11, %c0_12, %c0_13] : memref<1x64x32xf32, #tpu.memory_space<vmem>>, vector<1x64x32xf32>
    %13 = vector.shape_cast %12 : vector<1x64x32xf32> to vector<64x32xf32>
    %14 = vector.shape_cast %11 : vector<64x32xf32> to vector<1x64x32xf32>
    tpu.vector_store %arg5[%c0_11, %c0_12, %c0_13], %14 {strides = array<i32>} : memref<1x64x32xf32, #tpu.memory_space<vmem>>, vector<1x64x32xf32>,
    return
  }
  func.func @transform_0(%arg0: i32) -> (i32, i32, i32, i32) {
    %c0_i32 = arith.constant 0 : i32
    %c0_i32_0 = arith.constant 0 : i32
    %c0_i32_1 = arith.constant 0 : i32
    %c0_i32_2 = arith.constant 0 : i32
    return %arg0, %c0_i32, %c0_i32_0, %c0_i32_1 : i32, i32, i32, i32
  }
  func.func @transform_1(%arg0: i32) -> (i32, i32) {
    %c0_i32 = arith.constant 0 : i32
    %c0_i32_0 = arith.constant 0 : i32
    %c0_i32_1 = arith.constant 0 : i32
    return %c0_i32, %c0_i32_0 : i32, i32
  }
  func.func @transform_2(%arg0: i32) -> (i32, i32) {
    %c0_i32 = arith.constant 0 : i32
    %c0_i32_0 = arith.constant 0 : i32
    %c0_i32_1 = arith.constant 0 : i32
    return %c0_i32, %c0_i32_0 : i32, i32
  }
  func.func @transform_3(%arg0: i32) -> (i32, i32) {
    %c0_i32 = arith.constant 0 : i32
    %c0_i32_0 = arith.constant 0 : i32
    %c0_i32_1 = arith.constant 0 : i32
    return %c0_i32, %c0_i32_0 : i32, i32
  }
  func.func @transform_4(%arg0: i32) -> (i32, i32, i32) {
    %c0_i32 = arith.constant 0 : i32
    %c0_i32_0 = arith.constant 0 : i32
    %c0_i32_1 = arith.constant 0 : i32
    return %arg0, %c0_i32, %c0_i32_0 : i32, i32, i32
  }
}

module attributes {stable_mosaic.version = 11 : i64} {
  func.func @_skconv_kernel(%arg0: i32, %arg1: memref<1x12x12x32xf32, #tpu.memory_space<vmem>>, %arg2: memref<18x32xf32, #tpu.memory_space<vmem>>, %arg3: memref<2x32xf32, #tpu.memory_space<vmem>>, %arg4: memref<32x32xf32, #tpu.memory_space<vmem>>, %arg5: memref<1x32xf32, #tpu.memory_space<vmem>>, %arg6: memref<32x64xf32, #tpu.memory_space<vmem>>, %arg7: memref<1x64xf32, #tpu.memory_space<vmem>>, %arg8: memref<8x64xf32, #tpu.memory_space<vmem>>, %arg9: memref<64x8xf32, #tpu.memory_space<vmem>>, %arg10: memref<32x64xf32, #tpu.memory_space<vmem>>, %arg11: memref<32x16xf32, #tpu.memory_space<vmem>>, %arg12: memref<1x16xf32, #tpu.memory_space<vmem>>, %arg13: memref<1x2x32x16xf32, #tpu.memory_space<vmem>>) attributes {dimension_semantics = [#tpu.dimension_semantics<parallel>], iteration_bounds = array<i64: 2>, scalar_prefetch = 0 : i64, scratch_operands = 0 : i64, tpu.core_type = #tpu.core_type<tc>, window_params = [{transform_indices = @transform_0, window_bounds = array<i64: 1, 12, 12, 32>}, {pipeline_mode = #tpu.pipeline_mode<synchronous>, transform_indices = @transform_1, window_bounds = array<i64: 18, 32>}, {pipeline_mode = #tpu.pipeline_mode<synchronous>, transform_indices = @transform_2, window_bounds = array<i64: 2, 32>}, {pipeline_mode = #tpu.pipeline_mode<synchronous>, transform_indices = @transform_3, window_bounds = array<i64: 32, 32>}, {pipeline_mode = #tpu.pipeline_mode<synchronous>, transform_indices = @transform_4, window_bounds = array<i64: 1, 32>}, {pipeline_mode = #tpu.pipeline_mode<synchronous>, transform_indices = @transform_5, window_bounds = array<i64: 32, 64>}, {pipeline_mode = #tpu.pipeline_mode<synchronous>, transform_indices = @transform_6, window_bounds = array<i64: 1, 64>}, {pipeline_mode = #tpu.pipeline_mode<synchronous>, transform_indices = @transform_7, window_bounds = array<i64: 8, 64>}, {pipeline_mode = #tpu.pipeline_mode<synchronous>, transform_indices = @transform_8, window_bounds = array<i64: 64, 8>}, {pipeline_mode = #tpu.pipeline_mode<synchronous>, transform_indices = @transform_9, window_bounds = array<i64: 32, 64>}, {pipeline_mode = #tpu.pipeline_mode<synchronous>, transform_indices = @transform_10, window_bounds = array<i64: 32, 16>}, {pipeline_mode = #tpu.pipeline_mode<synchronous>, transform_indices = @transform_11, window_bounds = array<i64: 1, 16>}, {transform_indices = @transform_12, window_bounds = array<i64: 1, 2, 32, 16>}]} {
    %cst = arith.constant 0.000000e+00 : f32
    %0 = vector.broadcast %cst : f32 to vector<64x32xf32>
    %c0 = arith.constant 0 : index
    %c1 = arith.constant 1 : index
    %c1_0 = arith.constant 1 : index
    %c0_1 = arith.constant 0 : index
    %1 = vector.load %arg1[%c0, %c1, %c1_0, %c0_1] : memref<1x12x12x32xf32, #tpu.memory_space<vmem>>, vector<1x8x8x32xf32>
    %2 = vector.shape_cast %1 : vector<1x8x8x32xf32> to vector<8x8x32xf32>
    %3 = vector.shape_cast %2 : vector<8x8x32xf32> to vector<64x32xf32>
    %c0_2 = arith.constant 0 : index
    %c0_3 = arith.constant 0 : index
    %4 = vector.load %arg2[%c0_2, %c0_3] : memref<18x32xf32, #tpu.memory_space<vmem>>, vector<1x32xf32>
    %5 = vector.broadcast %4 : vector<1x32xf32> to vector<64x32xf32>
    %6 = arith.mulf %3, %5 : vector<64x32xf32>
    %7 = arith.addf %0, %6 : vector<64x32xf32>
    %c0_4 = arith.constant 0 : index
    %c1_5 = arith.constant 1 : index
    %c2 = arith.constant 2 : index
    %c0_6 = arith.constant 0 : index
    %8 = vector.load %arg1[%c0_4, %c1_5, %c2, %c0_6] : memref<1x12x12x32xf32, #tpu.memory_space<vmem>>, vector<1x8x8x32xf32>
    %9 = vector.shape_cast %8 : vector<1x8x8x32xf32> to vector<8x8x32xf32>
    %10 = vector.shape_cast %9 : vector<8x8x32xf32> to vector<64x32xf32>
    %c1_7 = arith.constant 1 : index
    %c0_8 = arith.constant 0 : index
    %11 = vector.load %arg2[%c1_7, %c0_8] : memref<18x32xf32, #tpu.memory_space<vmem>>, vector<1x32xf32>
    %12 = vector.broadcast %11 : vector<1x32xf32> to vector<64x32xf32>
    %13 = arith.mulf %10, %12 : vector<64x32xf32>
    %14 = arith.addf %7, %13 : vector<64x32xf32>
    %c0_9 = arith.constant 0 : index
    %c1_10 = arith.constant 1 : index
    %c3 = arith.constant 3 : index
    %c0_11 = arith.constant 0 : index
    %15 = vector.load %arg1[%c0_9, %c1_10, %c3, %c0_11] : memref<1x12x12x32xf32, #tpu.memory_space<vmem>>, vector<1x8x8x32xf32>
    %16 = vector.shape_cast %15 : vector<1x8x8x32xf32> to vector<8x8x32xf32>
    %17 = vector.shape_cast %16 : vector<8x8x32xf32> to vector<64x32xf32>
    %c2_12 = arith.constant 2 : index
    %c0_13 = arith.constant 0 : index
    %18 = vector.load %arg2[%c2_12, %c0_13] : memref<18x32xf32, #tpu.memory_space<vmem>>, vector<1x32xf32>
    %19 = vector.broadcast %18 : vector<1x32xf32> to vector<64x32xf32>
    %20 = arith.mulf %17, %19 : vector<64x32xf32>
    %21 = arith.addf %14, %20 : vector<64x32xf32>
    %c0_14 = arith.constant 0 : index
    %c2_15 = arith.constant 2 : index
    %c1_16 = arith.constant 1 : index
    %c0_17 = arith.constant 0 : index
    %22 = vector.load %arg1[%c0_14, %c2_15, %c1_16, %c0_17] : memref<1x12x12x32xf32, #tpu.memory_space<vmem>>, vector<1x8x8x32xf32>
    %23 = vector.shape_cast %22 : vector<1x8x8x32xf32> to vector<8x8x32xf32>
    %24 = vector.shape_cast %23 : vector<8x8x32xf32> to vector<64x32xf32>
    %c3_18 = arith.constant 3 : index
    %c0_19 = arith.constant 0 : index
    %25 = vector.load %arg2[%c3_18, %c0_19] : memref<18x32xf32, #tpu.memory_space<vmem>>, vector<1x32xf32>
    %26 = vector.broadcast %25 : vector<1x32xf32> to vector<64x32xf32>
    %27 = arith.mulf %24, %26 : vector<64x32xf32>
    %28 = arith.addf %21, %27 : vector<64x32xf32>
    %c0_20 = arith.constant 0 : index
    %c2_21 = arith.constant 2 : index
    %c2_22 = arith.constant 2 : index
    %c0_23 = arith.constant 0 : index
    %29 = vector.load %arg1[%c0_20, %c2_21, %c2_22, %c0_23] : memref<1x12x12x32xf32, #tpu.memory_space<vmem>>, vector<1x8x8x32xf32>
    %30 = vector.shape_cast %29 : vector<1x8x8x32xf32> to vector<8x8x32xf32>
    %31 = vector.shape_cast %30 : vector<8x8x32xf32> to vector<64x32xf32>
    %c4 = arith.constant 4 : index
    %c0_24 = arith.constant 0 : index
    %32 = vector.load %arg2[%c4, %c0_24] : memref<18x32xf32, #tpu.memory_space<vmem>>, vector<1x32xf32>
    %33 = vector.broadcast %32 : vector<1x32xf32> to vector<64x32xf32>
    %34 = arith.mulf %31, %33 : vector<64x32xf32>
    %35 = arith.addf %28, %34 : vector<64x32xf32>
    %c0_25 = arith.constant 0 : index
    %c2_26 = arith.constant 2 : index
    %c3_27 = arith.constant 3 : index
    %c0_28 = arith.constant 0 : index
    %36 = vector.load %arg1[%c0_25, %c2_26, %c3_27, %c0_28] : memref<1x12x12x32xf32, #tpu.memory_space<vmem>>, vector<1x8x8x32xf32>
    %37 = vector.shape_cast %36 : vector<1x8x8x32xf32> to vector<8x8x32xf32>
    %38 = vector.shape_cast %37 : vector<8x8x32xf32> to vector<64x32xf32>
    %c5 = arith.constant 5 : index
    %c0_29 = arith.constant 0 : index
    %39 = vector.load %arg2[%c5, %c0_29] : memref<18x32xf32, #tpu.memory_space<vmem>>, vector<1x32xf32>
    %40 = vector.broadcast %39 : vector<1x32xf32> to vector<64x32xf32>
    %41 = arith.mulf %38, %40 : vector<64x32xf32>
    %42 = arith.addf %35, %41 : vector<64x32xf32>
    %c0_30 = arith.constant 0 : index
    %c3_31 = arith.constant 3 : index
    %c1_32 = arith.constant 1 : index
    %c0_33 = arith.constant 0 : index
    %43 = vector.load %arg1[%c0_30, %c3_31, %c1_32, %c0_33] : memref<1x12x12x32xf32, #tpu.memory_space<vmem>>, vector<1x8x8x32xf32>
    %44 = vector.shape_cast %43 : vector<1x8x8x32xf32> to vector<8x8x32xf32>
    %45 = vector.shape_cast %44 : vector<8x8x32xf32> to vector<64x32xf32>
    %c6 = arith.constant 6 : index
    %c0_34 = arith.constant 0 : index
    %46 = vector.load %arg2[%c6, %c0_34] : memref<18x32xf32, #tpu.memory_space<vmem>>, vector<1x32xf32>
    %47 = vector.broadcast %46 : vector<1x32xf32> to vector<64x32xf32>
    %48 = arith.mulf %45, %47 : vector<64x32xf32>
    %49 = arith.addf %42, %48 : vector<64x32xf32>
    %c0_35 = arith.constant 0 : index
    %c3_36 = arith.constant 3 : index
    %c2_37 = arith.constant 2 : index
    %c0_38 = arith.constant 0 : index
    %50 = vector.load %arg1[%c0_35, %c3_36, %c2_37, %c0_38] : memref<1x12x12x32xf32, #tpu.memory_space<vmem>>, vector<1x8x8x32xf32>
    %51 = vector.shape_cast %50 : vector<1x8x8x32xf32> to vector<8x8x32xf32>
    %52 = vector.shape_cast %51 : vector<8x8x32xf32> to vector<64x32xf32>
    %c7 = arith.constant 7 : index
    %c0_39 = arith.constant 0 : index
    %53 = vector.load %arg2[%c7, %c0_39] : memref<18x32xf32, #tpu.memory_space<vmem>>, vector<1x32xf32>
    %54 = vector.broadcast %53 : vector<1x32xf32> to vector<64x32xf32>
    %55 = arith.mulf %52, %54 : vector<64x32xf32>
    %56 = arith.addf %49, %55 : vector<64x32xf32>
    %c0_40 = arith.constant 0 : index
    %c3_41 = arith.constant 3 : index
    %c3_42 = arith.constant 3 : index
    %c0_43 = arith.constant 0 : index
    %57 = vector.load %arg1[%c0_40, %c3_41, %c3_42, %c0_43] : memref<1x12x12x32xf32, #tpu.memory_space<vmem>>, vector<1x8x8x32xf32>
    %58 = vector.shape_cast %57 : vector<1x8x8x32xf32> to vector<8x8x32xf32>
    %59 = vector.shape_cast %58 : vector<8x8x32xf32> to vector<64x32xf32>
    %c8 = arith.constant 8 : index
    %c0_44 = arith.constant 0 : index
    %60 = vector.load %arg2[%c8, %c0_44] : memref<18x32xf32, #tpu.memory_space<vmem>>, vector<1x32xf32>
    %61 = vector.broadcast %60 : vector<1x32xf32> to vector<64x32xf32>
    %62 = arith.mulf %59, %61 : vector<64x32xf32>
    %63 = arith.addf %56, %62 : vector<64x32xf32>
    %c0_45 = arith.constant 0 : index
    %c0_46 = arith.constant 0 : index
    %64 = vector.load %arg3[%c0_45, %c0_46] : memref<2x32xf32, #tpu.memory_space<vmem>>, vector<1x32xf32>
    %65 = vector.broadcast %64 : vector<1x32xf32> to vector<64x32xf32>
    %66 = arith.addf %63, %65 : vector<64x32xf32>
    %cst_47 = arith.constant 0.000000e+00 : f32
    %67 = vector.broadcast %cst_47 : f32 to vector<64x32xf32>
    %68 = arith.maximumf %66, %67 : vector<64x32xf32>
    %cst_48 = arith.constant 0.000000e+00 : f32
    %69 = vector.broadcast %cst_48 : f32 to vector<64x32xf32>
    %c0_49 = arith.constant 0 : index
    %c0_50 = arith.constant 0 : index
    %c0_51 = arith.constant 0 : index
    %c0_52 = arith.constant 0 : index
    %70 = vector.load %arg1[%c0_49, %c0_50, %c0_51, %c0_52] : memref<1x12x12x32xf32, #tpu.memory_space<vmem>>, vector<1x8x8x32xf32>
    %71 = vector.shape_cast %70 : vector<1x8x8x32xf32> to vector<8x8x32xf32>
    %72 = vector.shape_cast %71 : vector<8x8x32xf32> to vector<64x32xf32>
    %c9 = arith.constant 9 : index
    %c0_53 = arith.constant 0 : index
    %73 = vector.load %arg2[%c9, %c0_53] : memref<18x32xf32, #tpu.memory_space<vmem>>, vector<1x32xf32>
    %74 = vector.broadcast %73 : vector<1x32xf32> to vector<64x32xf32>
    %75 = arith.mulf %72, %74 : vector<64x32xf32>
    %76 = arith.addf %69, %75 : vector<64x32xf32>
    %c0_54 = arith.constant 0 : index
    %c0_55 = arith.constant 0 : index
    %c2_56 = arith.constant 2 : index
    %c0_57 = arith.constant 0 : index
    %77 = vector.load %arg1[%c0_54, %c0_55, %c2_56, %c0_57] : memref<1x12x12x32xf32, #tpu.memory_space<vmem>>, vector<1x8x8x32xf32>
    %78 = vector.shape_cast %77 : vector<1x8x8x32xf32> to vector<8x8x32xf32>
    %79 = vector.shape_cast %78 : vector<8x8x32xf32> to vector<64x32xf32>
    %c10 = arith.constant 10 : index
    %c0_58 = arith.constant 0 : index
    %80 = vector.load %arg2[%c10, %c0_58] : memref<18x32xf32, #tpu.memory_space<vmem>>, vector<1x32xf32>
    %81 = vector.broadcast %80 : vector<1x32xf32> to vector<64x32xf32>
    %82 = arith.mulf %79, %81 : vector<64x32xf32>
    %83 = arith.addf %76, %82 : vector<64x32xf32>
    %c0_59 = arith.constant 0 : index
    %c0_60 = arith.constant 0 : index
    %c4_61 = arith.constant 4 : index
    %c0_62 = arith.constant 0 : index
    %84 = vector.load %arg1[%c0_59, %c0_60, %c4_61, %c0_62] : memref<1x12x12x32xf32, #tpu.memory_space<vmem>>, vector<1x8x8x32xf32>
    %85 = vector.shape_cast %84 : vector<1x8x8x32xf32> to vector<8x8x32xf32>
    %86 = vector.shape_cast %85 : vector<8x8x32xf32> to vector<64x32xf32>
    %c11 = arith.constant 11 : index
    %c0_63 = arith.constant 0 : index
    %87 = vector.load %arg2[%c11, %c0_63] : memref<18x32xf32, #tpu.memory_space<vmem>>, vector<1x32xf32>
    %88 = vector.broadcast %87 : vector<1x32xf32> to vector<64x32xf32>
    %89 = arith.mulf %86, %88 : vector<64x32xf32>
    %90 = arith.addf %83, %89 : vector<64x32xf32>
    %c0_64 = arith.constant 0 : index
    %c2_65 = arith.constant 2 : index
    %c0_66 = arith.constant 0 : index
    %c0_67 = arith.constant 0 : index
    %91 = vector.load %arg1[%c0_64, %c2_65, %c0_66, %c0_67] : memref<1x12x12x32xf32, #tpu.memory_space<vmem>>, vector<1x8x8x32xf32>
    %92 = vector.shape_cast %91 : vector<1x8x8x32xf32> to vector<8x8x32xf32>
    %93 = vector.shape_cast %92 : vector<8x8x32xf32> to vector<64x32xf32>
    %c12 = arith.constant 12 : index
    %c0_68 = arith.constant 0 : index
    %94 = vector.load %arg2[%c12, %c0_68] : memref<18x32xf32, #tpu.memory_space<vmem>>, vector<1x32xf32>
    %95 = vector.broadcast %94 : vector<1x32xf32> to vector<64x32xf32>
    %96 = arith.mulf %93, %95 : vector<64x32xf32>
    %97 = arith.addf %90, %96 : vector<64x32xf32>
    %c0_69 = arith.constant 0 : index
    %c2_70 = arith.constant 2 : index
    %c2_71 = arith.constant 2 : index
    %c0_72 = arith.constant 0 : index
    %98 = vector.load %arg1[%c0_69, %c2_70, %c2_71, %c0_72] : memref<1x12x12x32xf32, #tpu.memory_space<vmem>>, vector<1x8x8x32xf32>
    %99 = vector.shape_cast %98 : vector<1x8x8x32xf32> to vector<8x8x32xf32>
    %100 = vector.shape_cast %99 : vector<8x8x32xf32> to vector<64x32xf32>
    %c13 = arith.constant 13 : index
    %c0_73 = arith.constant 0 : index
    %101 = vector.load %arg2[%c13, %c0_73] : memref<18x32xf32, #tpu.memory_space<vmem>>, vector<1x32xf32>
    %102 = vector.broadcast %101 : vector<1x32xf32> to vector<64x32xf32>
    %103 = arith.mulf %100, %102 : vector<64x32xf32>
    %104 = arith.addf %97, %103 : vector<64x32xf32>
    %c0_74 = arith.constant 0 : index
    %c2_75 = arith.constant 2 : index
    %c4_76 = arith.constant 4 : index
    %c0_77 = arith.constant 0 : index
    %105 = vector.load %arg1[%c0_74, %c2_75, %c4_76, %c0_77] : memref<1x12x12x32xf32, #tpu.memory_space<vmem>>, vector<1x8x8x32xf32>
    %106 = vector.shape_cast %105 : vector<1x8x8x32xf32> to vector<8x8x32xf32>
    %107 = vector.shape_cast %106 : vector<8x8x32xf32> to vector<64x32xf32>
    %c14 = arith.constant 14 : index
    %c0_78 = arith.constant 0 : index
    %108 = vector.load %arg2[%c14, %c0_78] : memref<18x32xf32, #tpu.memory_space<vmem>>, vector<1x32xf32>
    %109 = vector.broadcast %108 : vector<1x32xf32> to vector<64x32xf32>
    %110 = arith.mulf %107, %109 : vector<64x32xf32>
    %111 = arith.addf %104, %110 : vector<64x32xf32>
    %c0_79 = arith.constant 0 : index
    %c4_80 = arith.constant 4 : index
    %c0_81 = arith.constant 0 : index
    %c0_82 = arith.constant 0 : index
    %112 = vector.load %arg1[%c0_79, %c4_80, %c0_81, %c0_82] : memref<1x12x12x32xf32, #tpu.memory_space<vmem>>, vector<1x8x8x32xf32>
    %113 = vector.shape_cast %112 : vector<1x8x8x32xf32> to vector<8x8x32xf32>
    %114 = vector.shape_cast %113 : vector<8x8x32xf32> to vector<64x32xf32>
    %c15 = arith.constant 15 : index
    %c0_83 = arith.constant 0 : index
    %115 = vector.load %arg2[%c15, %c0_83] : memref<18x32xf32, #tpu.memory_space<vmem>>, vector<1x32xf32>
    %116 = vector.broadcast %115 : vector<1x32xf32> to vector<64x32xf32>
    %117 = arith.mulf %114, %116 : vector<64x32xf32>
    %118 = arith.addf %111, %117 : vector<64x32xf32>
    %c0_84 = arith.constant 0 : index
    %c4_85 = arith.constant 4 : index
    %c2_86 = arith.constant 2 : index
    %c0_87 = arith.constant 0 : index
    %119 = vector.load %arg1[%c0_84, %c4_85, %c2_86, %c0_87] : memref<1x12x12x32xf32, #tpu.memory_space<vmem>>, vector<1x8x8x32xf32>
    %120 = vector.shape_cast %119 : vector<1x8x8x32xf32> to vector<8x8x32xf32>
    %121 = vector.shape_cast %120 : vector<8x8x32xf32> to vector<64x32xf32>
    %c16 = arith.constant 16 : index
    %c0_88 = arith.constant 0 : index
    %122 = vector.load %arg2[%c16, %c0_88] : memref<18x32xf32, #tpu.memory_space<vmem>>, vector<1x32xf32>
    %123 = vector.broadcast %122 : vector<1x32xf32> to vector<64x32xf32>
    %124 = arith.mulf %121, %123 : vector<64x32xf32>
    %125 = arith.addf %118, %124 : vector<64x32xf32>
    %c0_89 = arith.constant 0 : index
    %c4_90 = arith.constant 4 : index
    %c4_91 = arith.constant 4 : index
    %c0_92 = arith.constant 0 : index
    %126 = vector.load %arg1[%c0_89, %c4_90, %c4_91, %c0_92] : memref<1x12x12x32xf32, #tpu.memory_space<vmem>>, vector<1x8x8x32xf32>
    %127 = vector.shape_cast %126 : vector<1x8x8x32xf32> to vector<8x8x32xf32>
    %128 = vector.shape_cast %127 : vector<8x8x32xf32> to vector<64x32xf32>
    %c17 = arith.constant 17 : index
    %c0_93 = arith.constant 0 : index
    %129 = vector.load %arg2[%c17, %c0_93] : memref<18x32xf32, #tpu.memory_space<vmem>>, vector<1x32xf32>
    %130 = vector.broadcast %129 : vector<1x32xf32> to vector<64x32xf32>
    %131 = arith.mulf %128, %130 : vector<64x32xf32>
    %132 = arith.addf %125, %131 : vector<64x32xf32>
    %c1_94 = arith.constant 1 : index
    %c0_95 = arith.constant 0 : index
    %133 = vector.load %arg3[%c1_94, %c0_95] : memref<2x32xf32, #tpu.memory_space<vmem>>, vector<1x32xf32>
    %134 = vector.broadcast %133 : vector<1x32xf32> to vector<64x32xf32>
    %135 = arith.addf %132, %134 : vector<64x32xf32>
    %cst_96 = arith.constant 0.000000e+00 : f32
    %136 = vector.broadcast %cst_96 : f32 to vector<64x32xf32>
    %137 = arith.maximumf %135, %136 : vector<64x32xf32>
    %138 = arith.addf %68, %137 : vector<64x32xf32>
    %cst_97 = arith.constant dense<0.000000e+00> : vector<32xf32>
    %139 = vector.multi_reduction <add>, %138, %cst_97 [0] : vector<64x32xf32> to vector<32xf32>
    %140 = vector.shape_cast %139 : vector<32xf32> to vector<1x32xf32>
    %cst_98 = arith.constant 1.562500e-02 : f32
    %141 = vector.broadcast %cst_98 : f32 to vector<1x32xf32>
    %142 = arith.mulf %140, %141 : vector<1x32xf32>
    %c0_99 = arith.constant 0 : index
    %c0_100 = arith.constant 0 : index
    %143 = vector.load %arg4[%c0_99, %c0_100] : memref<32x32xf32, #tpu.memory_space<vmem>>, vector<32x32xf32>
    %cst_101 = arith.constant dense<0.000000e+00> : vector<1x32xf32>
    %144 = tpu.matmul %142, %143, %cst_101 {dimension_numbers = #tpu.dot_dimension_numbers<[1], [0], [0], [1], [0, 0, 1, 1], [], []>} : vector<1x32xf32>, vector<32x32xf32>, vector<1x32xf32> -> vector<1x32xf32>
    %c0_102 = arith.constant 0 : index
    %c0_103 = arith.constant 0 : index
    %145 = vector.load %arg5[%c0_102, %c0_103] : memref<1x32xf32, #tpu.memory_space<vmem>>, vector<1x32xf32>
    %146 = arith.addf %144, %145 : vector<1x32xf32>
    %cst_104 = arith.constant 0.000000e+00 : f32
    %147 = vector.broadcast %cst_104 : f32 to vector<1x32xf32>
    %148 = arith.maximumf %146, %147 : vector<1x32xf32>
    %c0_105 = arith.constant 0 : index
    %c0_106 = arith.constant 0 : index
    %149 = vector.load %arg6[%c0_105, %c0_106] : memref<32x64xf32, #tpu.memory_space<vmem>>, vector<32x64xf32>
    %cst_107 = arith.constant dense<0.000000e+00> : vector<1x64xf32>
    %150 = tpu.matmul %148, %149, %cst_107 {dimension_numbers = #tpu.dot_dimension_numbers<[1], [0], [0], [1], [0, 0, 1, 1], [], []>} : vector<1x32xf32>, vector<32x64xf32>, vector<1x64xf32> -> vector<1x64xf32>
    %c0_108 = arith.constant 0 : index
    %c0_109 = arith.constant 0 : index
    %151 = vector.load %arg7[%c0_108, %c0_109] : memref<1x64xf32, #tpu.memory_space<vmem>>, vector<1x64xf32>
    %152 = arith.addf %150, %151 : vector<1x64xf32>
    %153 = vector.extract_strided_slice %152 {offsets = [0, 0], sizes = [1, 32], strides = [1, 1]} : vector<1x64xf32> to vector<1x32xf32>
    %154 = vector.extract_strided_slice %152 {offsets = [0, 32], sizes = [1, 32], strides = [1, 1]} : vector<1x64xf32> to vector<1x32xf32>
    %155 = arith.maximumf %153, %154 : vector<1x32xf32>
    %156 = arith.subf %153, %155 : vector<1x32xf32>
    %157 = math.exp %156 : vector<1x32xf32>
    %158 = arith.subf %154, %155 : vector<1x32xf32>
    %159 = math.exp %158 : vector<1x32xf32>
    %160 = arith.addf %157, %159 : vector<1x32xf32>
    %161 = arith.divf %157, %160 : vector<1x32xf32>
    %162 = arith.divf %159, %160 : vector<1x32xf32>
    %c0_110 = arith.constant 0 : index
    %c0_111 = arith.constant 0 : index
    %163 = vector.load %arg8[%c0_110, %c0_111] : memref<8x64xf32, #tpu.memory_space<vmem>>, vector<8x64xf32>
    %cst_112 = arith.constant dense<0.000000e+00> : vector<8x32xf32>
    %164 = tpu.matmul %163, %68, %cst_112 {dimension_numbers = #tpu.dot_dimension_numbers<[1], [0], [0], [1], [0, 0, 1, 1], [], []>} : vector<8x64xf32>, vector<64x32xf32>, vector<8x32xf32> -> vector<8x32xf32>
    %c0_113 = arith.constant 0 : index
    %c0_114 = arith.constant 0 : index
    %165 = vector.load %arg8[%c0_113, %c0_114] : memref<8x64xf32, #tpu.memory_space<vmem>>, vector<8x64xf32>
    %cst_115 = arith.constant dense<0.000000e+00> : vector<8x32xf32>
    %166 = tpu.matmul %165, %137, %cst_115 {dimension_numbers = #tpu.dot_dimension_numbers<[1], [0], [0], [1], [0, 0, 1, 1], [], []>} : vector<8x64xf32>, vector<64x32xf32>, vector<8x32xf32> -> vector<8x32xf32>
    %cst_116 = arith.constant dense<0.000000e+00> : vector<8xf32>
    %167 = vector.multi_reduction <add>, %164, %cst_116 [1] : vector<8x32xf32> to vector<8xf32>
    %168 = vector.shape_cast %167 : vector<8xf32> to vector<8x1xf32>
    %cst_117 = arith.constant 1.250000e-01 : f32
    %169 = vector.broadcast %cst_117 : f32 to vector<8x1xf32>
    %170 = arith.mulf %168, %169 : vector<8x1xf32>
    %cst_118 = arith.constant dense<0.000000e+00> : vector<8xf32>
    %171 = vector.multi_reduction <add>, %166, %cst_118 [1] : vector<8x32xf32> to vector<8xf32>
    %172 = vector.shape_cast %171 : vector<8xf32> to vector<8x1xf32>
    %cst_119 = arith.constant 1.250000e-01 : f32
    %173 = vector.broadcast %cst_119 : f32 to vector<8x1xf32>
    %174 = arith.mulf %172, %173 : vector<8x1xf32>
    %175 = arith.maximumf %170, %174 : vector<8x1xf32>
    %176 = arith.subf %170, %175 : vector<8x1xf32>
    %177 = math.exp %176 : vector<8x1xf32>
    %178 = arith.subf %174, %175 : vector<8x1xf32>
    %179 = math.exp %178 : vector<8x1xf32>
    %180 = arith.addf %177, %179 : vector<8x1xf32>
    %c0_120 = arith.constant 0 : index
    %c0_121 = arith.constant 0 : index
    %181 = vector.load %arg9[%c0_120, %c0_121] : memref<64x8xf32, #tpu.memory_space<vmem>>, vector<64x8xf32>
    %182 = arith.divf %177, %180 : vector<8x1xf32>
    %183 = vector.shape_cast %182 : vector<8x1xf32> to vector<8x1xf32>
    %184 = vector.broadcast %183 : vector<8x1xf32> to vector<8x32xf32>
    %cst_122 = arith.constant dense<0.000000e+00> : vector<64x32xf32>
    %185 = tpu.matmul %181, %184, %cst_122 {dimension_numbers = #tpu.dot_dimension_numbers<[1], [0], [0], [1], [0, 0, 1, 1], [], []>} : vector<64x8xf32>, vector<8x32xf32>, vector<64x32xf32> -> vector<64x32xf32>
    %c0_123 = arith.constant 0 : index
    %c0_124 = arith.constant 0 : index
    %186 = vector.load %arg9[%c0_123, %c0_124] : memref<64x8xf32, #tpu.memory_space<vmem>>, vector<64x8xf32>
    %187 = arith.divf %179, %180 : vector<8x1xf32>
    %188 = vector.shape_cast %187 : vector<8x1xf32> to vector<8x1xf32>
    %189 = vector.broadcast %188 : vector<8x1xf32> to vector<8x32xf32>
    %cst_125 = arith.constant dense<0.000000e+00> : vector<64x32xf32>
    %190 = tpu.matmul %186, %189, %cst_125 {dimension_numbers = #tpu.dot_dimension_numbers<[1], [0], [0], [1], [0, 0, 1, 1], [], []>} : vector<64x8xf32>, vector<8x32xf32>, vector<64x32xf32> -> vector<64x32xf32>
    %191 = vector.broadcast %161 : vector<1x32xf32> to vector<64x32xf32>
    %192 = arith.mulf %68, %191 : vector<64x32xf32>
    %193 = vector.broadcast %162 : vector<1x32xf32> to vector<64x32xf32>
    %194 = arith.mulf %137, %193 : vector<64x32xf32>
    %195 = arith.addf %192, %194 : vector<64x32xf32>
    %196 = arith.mulf %68, %185 : vector<64x32xf32>
    %197 = arith.mulf %137, %190 : vector<64x32xf32>
    %198 = arith.addf %196, %197 : vector<64x32xf32>
    %c0_126 = arith.constant 0 : index
    %c0_127 = arith.constant 0 : index
    %199 = vector.load %arg10[%c0_126, %c0_127] : memref<32x64xf32, #tpu.memory_space<vmem>>, vector<32x64xf32>
    %cst_128 = arith.constant dense<0.000000e+00> : vector<32x32xf32>
    %200 = tpu.matmul %199, %195, %cst_128 {dimension_numbers = #tpu.dot_dimension_numbers<[1], [0], [0], [1], [0, 0, 1, 1], [], []>} : vector<32x64xf32>, vector<64x32xf32>, vector<32x32xf32> -> vector<32x32xf32>
    %c0_129 = arith.constant 0 : index
    %c0_130 = arith.constant 0 : index
    %201 = vector.load %arg10[%c0_129, %c0_130] : memref<32x64xf32, #tpu.memory_space<vmem>>, vector<32x64xf32>
    %cst_131 = arith.constant dense<0.000000e+00> : vector<32x32xf32>
    %202 = tpu.matmul %201, %198, %cst_131 {dimension_numbers = #tpu.dot_dimension_numbers<[1], [0], [0], [1], [0, 0, 1, 1], [], []>} : vector<32x64xf32>, vector<64x32xf32>, vector<32x32xf32> -> vector<32x32xf32>
    %c0_132 = arith.constant 0 : index
    %c0_133 = arith.constant 0 : index
    %203 = vector.load %arg11[%c0_132, %c0_133] : memref<32x16xf32, #tpu.memory_space<vmem>>, vector<32x16xf32>
    %cst_134 = arith.constant dense<0.000000e+00> : vector<32x16xf32>
    %204 = tpu.matmul %200, %203, %cst_134 {dimension_numbers = #tpu.dot_dimension_numbers<[1], [0], [0], [1], [0, 0, 1, 1], [], []>} : vector<32x32xf32>, vector<32x16xf32>, vector<32x16xf32> -> vector<32x16xf32>
    %c0_135 = arith.constant 0 : index
    %c0_136 = arith.constant 0 : index
    %205 = vector.load %arg12[%c0_135, %c0_136] : memref<1x16xf32, #tpu.memory_space<vmem>>, vector<1x16xf32>
    %206 = vector.broadcast %205 : vector<1x16xf32> to vector<32x16xf32>
    %207 = arith.addf %204, %206 : vector<32x16xf32>
    %c0_137 = arith.constant 0 : index
    %c0_138 = arith.constant 0 : index
    %c0_139 = arith.constant 0 : index
    %c0_140 = arith.constant 0 : index
    %208 = vector.load %arg13[%c0_137, %c0_138, %c0_139, %c0_140] : memref<1x2x32x16xf32, #tpu.memory_space<vmem>>, vector<1x1x32x16xf32>
    %209 = vector.shape_cast %208 : vector<1x1x32x16xf32> to vector<32x16xf32>
    %210 = vector.shape_cast %207 : vector<32x16xf32> to vector<1x1x32x16xf32>
    tpu.vector_store %arg13[%c0_137, %c0_138, %c0_139, %c0_140], %210 {strides = array<i32>} : memref<1x2x32x16xf32, #tpu.memory_space<vmem>>, vector<1x1x32x16xf32>,
    %c0_141 = arith.constant 0 : index
    %c0_142 = arith.constant 0 : index
    %211 = vector.load %arg11[%c0_141, %c0_142] : memref<32x16xf32, #tpu.memory_space<vmem>>, vector<32x16xf32>
    %cst_143 = arith.constant dense<0.000000e+00> : vector<32x16xf32>
    %212 = tpu.matmul %202, %211, %cst_143 {dimension_numbers = #tpu.dot_dimension_numbers<[1], [0], [0], [1], [0, 0, 1, 1], [], []>} : vector<32x32xf32>, vector<32x16xf32>, vector<32x16xf32> -> vector<32x16xf32>
    %c0_144 = arith.constant 0 : index
    %c0_145 = arith.constant 0 : index
    %213 = vector.load %arg12[%c0_144, %c0_145] : memref<1x16xf32, #tpu.memory_space<vmem>>, vector<1x16xf32>
    %214 = vector.broadcast %213 : vector<1x16xf32> to vector<32x16xf32>
    %215 = arith.addf %212, %214 : vector<32x16xf32>
    %c0_146 = arith.constant 0 : index
    %c1_147 = arith.constant 1 : index
    %c0_148 = arith.constant 0 : index
    %c0_149 = arith.constant 0 : index
    %216 = vector.load %arg13[%c0_146, %c1_147, %c0_148, %c0_149] : memref<1x2x32x16xf32, #tpu.memory_space<vmem>>, vector<1x1x32x16xf32>
    %217 = vector.shape_cast %216 : vector<1x1x32x16xf32> to vector<32x16xf32>
    %218 = vector.shape_cast %215 : vector<32x16xf32> to vector<1x1x32x16xf32>
    tpu.vector_store %arg13[%c0_146, %c1_147, %c0_148, %c0_149], %218 {strides = array<i32>} : memref<1x2x32x16xf32, #tpu.memory_space<vmem>>, vector<1x1x32x16xf32>,
    return
  }
  func.func @transform_0(%arg0: i32) -> (i32, i32, i32, i32) {
    %c0_i32 = arith.constant 0 : i32
    %c0_i32_0 = arith.constant 0 : i32
    %c0_i32_1 = arith.constant 0 : i32
    %c0_i32_2 = arith.constant 0 : i32
    return %arg0, %c0_i32, %c0_i32_0, %c0_i32_1 : i32, i32, i32, i32
  }
  func.func @transform_1(%arg0: i32) -> (i32, i32) {
    %c0_i32 = arith.constant 0 : i32
    %c0_i32_0 = arith.constant 0 : i32
    %c0_i32_1 = arith.constant 0 : i32
    return %c0_i32, %c0_i32_0 : i32, i32
  }
  func.func @transform_2(%arg0: i32) -> (i32, i32) {
    %c0_i32 = arith.constant 0 : i32
    %c0_i32_0 = arith.constant 0 : i32
    %c0_i32_1 = arith.constant 0 : i32
    return %c0_i32, %c0_i32_0 : i32, i32
  }
  func.func @transform_3(%arg0: i32) -> (i32, i32) {
    %c0_i32 = arith.constant 0 : i32
    %c0_i32_0 = arith.constant 0 : i32
    %c0_i32_1 = arith.constant 0 : i32
    return %c0_i32, %c0_i32_0 : i32, i32
  }
  func.func @transform_4(%arg0: i32) -> (i32, i32) {
    %c0_i32 = arith.constant 0 : i32
    %c0_i32_0 = arith.constant 0 : i32
    %c0_i32_1 = arith.constant 0 : i32
    return %c0_i32, %c0_i32_0 : i32, i32
  }
  func.func @transform_5(%arg0: i32) -> (i32, i32) {
    %c0_i32 = arith.constant 0 : i32
    %c0_i32_0 = arith.constant 0 : i32
    %c0_i32_1 = arith.constant 0 : i32
    return %c0_i32, %c0_i32_0 : i32, i32
  }
  func.func @transform_6(%arg0: i32) -> (i32, i32) {
    %c0_i32 = arith.constant 0 : i32
    %c0_i32_0 = arith.constant 0 : i32
    %c0_i32_1 = arith.constant 0 : i32
    return %c0_i32, %c0_i32_0 : i32, i32
  }
  func.func @transform_7(%arg0: i32) -> (i32, i32) {
    %c0_i32 = arith.constant 0 : i32
    %c0_i32_0 = arith.constant 0 : i32
    %c0_i32_1 = arith.constant 0 : i32
    return %c0_i32, %c0_i32_0 : i32, i32
  }
  func.func @transform_8(%arg0: i32) -> (i32, i32) {
    %c0_i32 = arith.constant 0 : i32
    %c0_i32_0 = arith.constant 0 : i32
    %c0_i32_1 = arith.constant 0 : i32
    return %c0_i32, %c0_i32_0 : i32, i32
  }
  func.func @transform_9(%arg0: i32) -> (i32, i32) {
    %c0_i32 = arith.constant 0 : i32
    %c0_i32_0 = arith.constant 0 : i32
    %c0_i32_1 = arith.constant 0 : i32
    return %c0_i32, %c0_i32_0 : i32, i32
  }
  func.func @transform_10(%arg0: i32) -> (i32, i32) {
    %c0_i32 = arith.constant 0 : i32
    %c0_i32_0 = arith.constant 0 : i32
    %c0_i32_1 = arith.constant 0 : i32
    return %c0_i32, %c0_i32_0 : i32, i32
  }
  func.func @transform_11(%arg0: i32) -> (i32, i32) {
    %c0_i32 = arith.constant 0 : i32
    %c0_i32_0 = arith.constant 0 : i32
    %c0_i32_1 = arith.constant 0 : i32
    return %c0_i32, %c0_i32_0 : i32, i32
  }
  func.func @transform_12(%arg0: i32) -> (i32, i32, i32, i32) {
    %c0_i32 = arith.constant 0 : i32
    %c0_i32_0 = arith.constant 0 : i32
    %c0_i32_1 = arith.constant 0 : i32
    %c0_i32_2 = arith.constant 0 : i32
    return %arg0, %c0_i32, %c0_i32_0, %c0_i32_1 : i32, i32, i32, i32
  }
}

</mosaic_0001>

<bundles_post_ra>
// kernel: sk_unit_forward.2
= control target key start
LH: loop header
LB: loop body
LE: loop exit
PB: predicated region body
PF: predicated region fallthrough
CT: control target
= control target key end

     0   :  { %s1003_s15 = smov 0   ;;  %s1238_s0 = inlined_call_operand.vmem [shape: f32[2,16,16,8], index: 0, kind: input, shape index: {}]   ;;  %s1239_s1 = inlined_call_operand.vmem [shape: f32[8,32], index: 1, kind: input, shape index: {}]   ;;  %s1240_s2 = inlined_call_operand.vmem [shape: f32[1,32], index: 2, kind: input, shape index: {}]   ;;  %s1241_s3 = inlined_call_operand.vmem [shape: f32[64,256], index: 3, kind: input, shape index: {}]   ;;  %s1242_s4 = inlined_call_operand.vmem [shape: f32[2,64,32], index: 4, kind: output, shape index: {}]  }
   0x1 LB: > { %s777_s16 = sadd.s32 4294967295, %s976_s15   ;;  %p781_p0 = scmp.ge.s32.totalorder %s976_s15, 1  ;;  %s976_s15 = sphi %s1003_s15, %s14_s15  }
   0x2   : > { %p162_p1 = scmp.lt.s32.totalorder %s976_s15, 3 }
   0x4   : > { %p163_p2 = pnand %p781_p0, %p162_p1 }
   0x5   : > { %p188_p3 = scmp.lt.s32.totalorder (!%p163_p2), %s777_s16, 1 }
   0x6   : > { %166 = sbr.rel (%p163_p2) target bundleno = 531 (0x213), region = 36 }
   0xb   : > { %v230_v0 = vld [vmem:[%s1239_s1] sm:$0xff]  ;;  %s1244_s16 = smov (!%p188_p3, %s777_s16), 1  ;;  %vm238_vm0 = vcmask 64512   ;;  %v593_v33 = vld [vmem:[%s1241_s3 + $0x8] sm:$0xff]  ;;  %vm713_vm1 = vcmask 261120  }
   0xc   : > { %912 = vmatprep.subr.mxu0 %v230_v0  ;;  %s821_s19 = sshll.u32 %s1244_s16, 8  ;;  %672 = vmatprep.mubr.f32.mxu1 %v593_v33  ;;  %s822_s7 = sshll.u32 %s1244_s16, 6 }
   0xd   : > { %913 = vmatpush3.msra.mxu0 %v230_v0  ;;  %s1020_s22 = scalar_lea.vmem %s1238_s0, %s821_s19  ;;  %v1120_v0 = vld [vmem:[%s1240_s2] ss:$0 sm:$0xff]  ;;  %s1217_s10 = scalar_lea.vmem %s1242_s4, %s822_s7 }
   0xe   : > { %v198_v1 = vld [vmem:[%s1020_s22] sm:$0xff]  ;;  %v199_v2 = vld [vmem:[%s1020_s22 + $0x8] sm:$0xff]  ;;  %v200_v3 = vld [vmem:[%s1020_s22 + $0x10] sm:$0xff] }
   0xf   : > { %914 = vmatprep.mubr.msk.f32.mxu0 %vm238_vm0, %v198_v1  ;;  %v201_v4 = vld [vmem:[%s1020_s22 + $0x18] sm:$0xff]  ;;  %v202_v5 = vld [vmem:[%s1020_s22 + $0x20] sm:$0xff]  ;;  %v203_v6 = vld [vmem:[%s1020_s22 + $0x28] sm:$0xff] }
  0x10   : > { %915 = vmatmul.mubr.msk.f32.vlgmr.msra.gmra.mxu0 %vm238_vm0, %v199_v2  ;;  %v204_v7 = vld [vmem:[%s1020_s22 + $0x30] sm:$0xff]  ;;  %v205_v8 = vld [vmem:[%s1020_s22 + $0x38] sm:$0xff]  ;;  %v206_v9 = vld [vmem:[%s1020_s22 + $0x40] sm:$0xff] }
  0x11   : > { %917 = vmatprep.mubr.msk.f32.mxu0 %vm238_vm0, %v200_v3  ;;  %v207_v10 = vld [vmem:[%s1020_s22 + $0x48] sm:$0xff]  ;;  %v208_v11 = vld [vmem:[%s1020_s22 + $0x50] sm:$0xff]  ;;  %v209_v12 = vld [vmem:[%s1020_s22 + $0x58] sm:$0xff] }
  0x12   : > { %v210_v13 = vld [vmem:[%s1020_s22 + $0x60] sm:$0xff]  ;;  %v211_v14 = vld [vmem:[%s1020_s22 + $0x68] sm:$0xff]  ;;  %v212_v15 = vld [vmem:[%s1020_s22 + $0x70] sm:$0xff] }
  0x13   : > { %v213_v16 = vld [vmem:[%s1020_s22 + $0x78] sm:$0xff]  ;;  %v214_v17 = vld [vmem:[%s1020_s22 + $0x80] sm:$0xff]  ;;  %v215_v18 = vld [vmem:[%s1020_s22 + $0x88] sm:$0xff] }
  0x14   : > { %918 = vmatmul.mubr.msk.f32.gmra.mxu0 %vm238_vm0, %v201_v4  ;;  %v216_v19 = vld [vmem:[%s1020_s22 + $0x90] sm:$0xff]  ;;  %v217_v20 = vld [vmem:[%s1020_s22 + $0x98] sm:$0xff]  ;;  %v218_v21 = vld [vmem:[%s1020_s22 + $0xa0] sm:$0xff] }
  0x15   : > { %920 = vmatprep.mubr.msk.f32.mxu0 %vm238_vm0, %v202_v5  ;;  %v219_v22 = vld [vmem:[%s1020_s22 + $0xa8] sm:$0xff]  ;;  %v220_v23 = vld [vmem:[%s1020_s22 + $0xb0] sm:$0xff]  ;;  %v221_v24 = vld [vmem:[%s1020_s22 + $0xb8] sm:$0xff] }
  0x16   : > { %v222_v25 = vld [vmem:[%s1020_s22 + $0xc0] sm:$0xff]  ;;  %v223_v26 = vld [vmem:[%s1020_s22 + $0xc8] sm:$0xff]  ;;  %v224_v27 = vld [vmem:[%s1020_s22 + $0xd0] sm:$0xff] }
  0x17   : > { %v225_v28 = vld [vmem:[%s1020_s22 + $0xd8] sm:$0xff]  ;;  %v226_v29 = vld [vmem:[%s1020_s22 + $0xe0] sm:$0xff]  ;;  %v227_v30 = vld [vmem:[%s1020_s22 + $0xe8] sm:$0xff] }
  0x18   : > { %921 = vmatmul.mubr.msk.f32.gmra.mxu0 %vm238_vm0, %v203_v6  ;;  %v228_v31 = vld [vmem:[%s1020_s22 + $0xf0] sm:$0xff]  ;;  %v229_v32 = vld [vmem:[%s1020_s22 + $0xf8] sm:$0xff] }
  0x19   : > { %923 = vmatprep.mubr.msk.f32.mxu0 %vm238_vm0, %v204_v7 }
  0x1c   : > { %924 = vmatmul.mubr.msk.f32.gmra.mxu0 %vm238_vm0, %v205_v8 }
  0x1d   : > { %926 = vmatprep.mubr.msk.f32.mxu0 %vm238_vm0, %v206_v9 }
  0x20   : > { %927 = vmatmul.mubr.msk.f32.gmra.mxu0 %vm238_vm0, %v207_v10 }
  0x21   : > { %929 = vmatprep.mubr.msk.f32.mxu0 %vm238_vm0, %v208_v11 }
  0x24   : > { %930 = vmatmul.mubr.msk.f32.gmra.mxu0 %vm238_vm0, %v209_v12 }
  0x25   : > { %932 = vmatprep.mubr.msk.f32.mxu0 %vm238_vm0, %v210_v13 }
  0x28   : > { %933 = vmatmul.mubr.msk.f32.gmra.mxu0 %vm238_vm0, %v211_v14 }
  0x29   : > { %935 = vmatprep.mubr.msk.f32.mxu0 %vm238_vm0, %v212_v15 }
  0x2c   : > { %936 = vmatmul.mubr.msk.f32.gmra.mxu0 %vm238_vm0, %v213_v16 }
  0x2d   : > { %938 = vmatprep.mubr.msk.f32.mxu0 %vm238_vm0, %v214_v17 }
  0x30   : > { %939 = vmatmul.mubr.msk.f32.gmra.mxu0 %vm238_vm0, %v215_v18 }
  0x31   : > { %941 = vmatprep.mubr.msk.f32.mxu0 %vm238_vm0, %v216_v19 }
  0x34   : > { %942 = vmatmul.mubr.msk.f32.gmra.mxu0 %vm238_vm0, %v217_v20 }
  0x35   : > { %944 = vmatprep.mubr.msk.f32.mxu0 %vm238_vm0, %v218_v21 }
  0x38   : > { %945 = vmatmul.mubr.msk.f32.gmra.mxu0 %vm238_vm0, %v219_v22 }
  0x39   : > { %947 = vmatprep.mubr.msk.f32.mxu0 %vm238_vm0, %v220_v23 }
  0x3c   : > { %948 = vmatmul.mubr.msk.f32.gmra.mxu0 %vm238_vm0, %v221_v24 }
  0x3d   : > { %950 = vmatprep.mubr.msk.f32.mxu0 %vm238_vm0, %v222_v25 }
  0x40   : > { %951 = vmatmul.mubr.msk.f32.gmra.mxu0 %vm238_vm0, %v223_v26 }
  0x41   : > { %953 = vmatprep.mubr.msk.f32.mxu0 %vm238_vm0, %v224_v27 }
  0x44   : > { %954 = vmatmul.mubr.msk.f32.gmra.mxu0 %vm238_vm0, %v225_v28 }
  0x45   : > { %956 = vmatprep.mubr.msk.f32.mxu0 %vm238_vm0, %v226_v29 }
  0x48   : > { %957 = vmatmul.mubr.msk.f32.gmra.mxu0 %vm238_vm0, %v227_v30 }
  0x49   : > { %959 = vmatprep.mubr.msk.f32.mxu0 %vm238_vm0, %v228_v31 }
  0x4c   : > { %960 = vmatmul.mubr.msk.f32.gmra.mxu0 %vm238_vm0, %v229_v32 }
  0xd0   : > { %v1089_v34 = vpop.f32.mrf.mxu0 }
  0xd2   : > { %v1091_v35 = vpop.f32.mrf.mxu0 }
  0xd4   : > { %v1093_v36 = vpop.f32.mrf.mxu0 }
  0xd6   : > { %v1095_v37 = vpop.f32.mrf.mxu0 }
  0xd8   : > { %v1097_v38 = vpop.f32.mrf.mxu0 }
  0xda   : > { %v1099_v39 = vpop.f32.mrf.mxu0 }
  0xdc   : > { %v1101_v40 = vpop.f32.mrf.mxu0 }
  0xdd   : > { %v437_v33 = vadd.f32 %v1101_v40, %v1120_v0 }
  0xde   : > { %v1103_v41 = vpop.f32.mrf.mxu0 }
  0xdf   : > { %v567_v40 = vmax.f32 %v437_v33, 0.0 }
  0xe0   : > { %v928_v42 = vpop.f32.mrf.mxu0 }
  0xe1   : > { %v447_v25 = vadd.f32 %v928_v42, %v1120_v0 }
  0xe2   : > { %v441_v43 = vpop.f32.mrf.mxu0 }
  0xe3   : > { %v442_v29 = vadd.f32 %v1120_v0, %v441_v43 }
  0xe4   : > { %v931_v44 = vpop.f32.mrf.mxu0 }
  0xe5   : > { %v457_v17 = vadd.f32 %v931_v44, %v1120_v0  ;;  %v569_v44 = vmax.f32 %v447_v25, 0.0 }
  0xe6   : > { %v451_v45 = vpop.f32.mrf.mxu0 }
  0xe7   : > { %v452_v21 = vadd.f32 %v1120_v0, %v451_v45  ;;  %v571_v26 = vmax.f32 %v457_v17, 0.0  ;;  %v606_v17 = vld [vmem:[%s1241_s3 + $0x70] sm:$0xff] }
  0xe8   : > { %v934_v46 = vpop.f32.mrf.mxu0 }
  0xe9   : > { %v467_v9 = vadd.f32 %v934_v46, %v1120_v0  ;;  %v570_v30 = vmax.f32 %v452_v21, 0.0  ;;  %v432_v46 = vadd.f32 %v1120_v0, %v1103_v41  ;;  %v422_v41 = vadd.f32 %v1120_v0, %v1099_v39 }
  0xea   : > { %v461_v47 = vpop.f32.mrf.mxu0  ;;  %v412_v39 = vadd.f32 %v1120_v0, %v1095_v37  ;;  %v402_v37 = vadd.f32 %v1120_v0, %v1091_v35  ;;  %v594_v35 = vld [vmem:[%s1241_s3 + $0x10] sm:$0xff] }
  0xeb   : > { %v462_v13 = vadd.f32 %v1120_v0, %v461_v47  ;;  %v573_v18 = vmax.f32 %v467_v9, 0.0  ;;  %v568_v47 = vmax.f32 %v442_v29, 0.0  ;;  %v598_v9 = vld [vmem:[%s1241_s3 + $0x30] sm:$0xff] }
  0xec   : > { %v937_v48 = vpop.f32.mrf.mxu0 }
  0xed   : > { %v477_v1 = vadd.f32 %v937_v48, %v1120_v0  ;;  %v572_v22 = vmax.f32 %v462_v13, 0.0  ;;  %v602_v13 = vld [vmem:[%s1241_s3 + $0x50] sm:$0xff] }
  0xee   : > { %v471_v49 = vpop.f32.mrf.mxu0 }
  0xef   : > { %v472_v4 = vadd.f32 %v1120_v0, %v471_v49  ;;  %v575_v10 = vmax.f32 %v477_v1, 0.0  ;;  %v427_v49 = vadd.f32 %v1097_v38, %v1120_v0  ;;  %v417_v38 = vadd.f32 %v1093_v36, %v1120_v0 }
  0xf0   : > { %v1105_v50 = vpop.f32.mrf.mxu0  ;;  %v407_v36 = vadd.f32 %v1089_v34, %v1120_v0  ;;  %v592_v34 = vld [vmem:[%s1241_s3] sm:$0xff] }
  0xf1   : > { %v574_v14 = vmax.f32 %v472_v4, 0.0  ;;  %v563_v1 = vmax.f32 %v417_v38, 0.0 }
  0xf2   : > { %v1107_v51 = vpop.f32.mrf.mxu0 }
  0xf4   : > { %v1109_v52 = vpop.f32.mrf.mxu0 }
  0xf6   : > { %v1111_v53 = vpop.f32.mrf.mxu0 }
  0xf8   : > { %v1113_v54 = vpop.f32.mrf.mxu0 }
  0xf9   : > { %v507_v43 = vadd.f32 %v1113_v54, %v1120_v0  ;;  %v497_v54 = vadd.f32 %v1109_v52, %v1120_v0  ;;  %v487_v52 = vadd.f32 %v1105_v50, %v1120_v0  ;;  %v561_v50 = vmax.f32 %v407_v36, 0.0 }
  0xfa   : > { %v1115_v55 = vpop.f32.mrf.mxu0 }
  0xfb   : > { %v577_v4 = vmax.f32 %v487_v52, 0.0 }
  0xfc   : > { %v949_v56 = vpop.f32.mrf.mxu0 }
  0xfd   : > { %v517_v31 = vadd.f32 %v949_v56, %v1120_v0  ;;  %v502_v56 = vadd.f32 %v1120_v0, %v1115_v55  ;;  %v492_v55 = vadd.f32 %v1120_v0, %v1111_v53  ;;  %v482_v53 = vadd.f32 %v1120_v0, %v1107_v51  ;;  %v595_v51 = vld [vmem:[%s1241_s3 + $0x18] sm:$0xff] }
  0xfe   : > { %v511_v57 = vpop.f32.mrf.mxu0 }
  0xff   : > { %v512_v42 = vadd.f32 %v1120_v0, %v511_v57  ;;  %v583_v48 = vmax.f32 %v517_v31, 0.0 }
 0x100   : > { %v952_v58 = vpop.f32.mrf.mxu0 }
 0x101   : > { %v527_v23 = vadd.f32 %v952_v58, %v1120_v0  ;;  %v582_v57 = vmax.f32 %v512_v42, 0.0  ;;  %v566_v58 = vmax.f32 %v432_v46, 0.0 }
 0x102   : > { %v521_v59 = vpop.f32.mrf.mxu0 }
 0x103   : > { %v522_v27 = vadd.f32 %v1120_v0, %v521_v59  ;;  %v585_v32 = vmax.f32 %v527_v23, 0.0  ;;  %v581_v59 = vmax.f32 %v507_v43, 0.0 }
 0x104   : > { %v955_v60 = vpop.f32.mrf.mxu0 }
 0x105   : > { %v537_v15 = vadd.f32 %v955_v60, %v1120_v0  ;;  %v584_v45 = vmax.f32 %v522_v27, 0.0  ;;  %v565_v60 = vmax.f32 %v427_v49, 0.0 }
 0x106   : > { %v531_v61 = vpop.f32.mrf.mxu0 }
 0x107   : > { %v532_v19 = vadd.f32 %v1120_v0, %v531_v61  ;;  %v587_v24 = vmax.f32 %v537_v15, 0.0  ;;  %v580_v61 = vmax.f32 %v502_v56, 0.0  ;;  %v604_v15 = vld [vmem:[%s1241_s3 + $0x60] sm:$0xff] }
 0x108   : > { %v958_v62 = vpop.f32.mrf.mxu0 }
 0x109   : > { %v547_v6 = vadd.f32 %v958_v62, %v1120_v0  ;;  %v586_v28 = vmax.f32 %v532_v19, 0.0  ;;  %v564_v62 = vmax.f32 %v422_v41, 0.0 }
 0x10a   : > { %v541_v63 = vpop.f32.mrf.mxu0 }
 0x10b   : > { %v542_v11 = vadd.f32 %v1120_v0, %v541_v63  ;;  %v589_v16 = vmax.f32 %v547_v6, 0.0  ;;  %v579_v63 = vmax.f32 %v497_v54, 0.0  ;;  %v560_v6 = vmax.f32 %v402_v37, 0.0 }
 0x10c   : > { %v961_v2 = vpop.f32.mrf.mxu0 }
 0x10d   : > { %v557_v3 = vadd.f32 %v961_v2, %v1120_v0  ;;  %v588_v20 = vmax.f32 %v542_v11, 0.0  ;;  %v578_v2 = vmax.f32 %v492_v55, 0.0  ;;  %v600_v11 = vld [vmem:[%s1241_s3 + $0x40] sm:$0xff] }
 0x10e   : > { %v551_v5 = vpop.f32.mrf.mxu0 }
 0x10f   : > { %v552_v7 = vadd.f32 %v1120_v0, %v551_v5  ;;  %v591_v8 = vmax.f32 %v557_v3, 0.0  ;;  %v562_v3 = vmax.f32 %v412_v39, 0.0  ;;  %v576_v5 = vmax.f32 %v482_v53, 0.0  ;;  %v597_v0 = vld [vmem:[%s1241_s3 + $0x28] sm:$0xff] }
 0x111   : > { %v590_v12 = vmax.f32 %v552_v7, 0.0  ;;  %856 = vmatprep.subr.mxu1 %v591_v8  ;;  %v596_v7 = vld [vmem:[%s1241_s3 + $0x20] sm:$0xff]  ;;  %v599_v8 = vld [vmem:[%s1241_s3 + $0x38] sm:$0xff] }
 0x112   : > { %857 = vmatpush3.msra.mxu1 %v575_v10  ;;  %v601_v10 = vld [vmem:[%s1241_s3 + $0x48] sm:$0xff] }
 0x113   : > { %858 = vmatprep.subr.mxu1 %v590_v12  ;;  %v603_v12 = vld [vmem:[%s1241_s3 + $0x58] sm:$0xff] }
 0x114   : > { %859 = vmatpush3.msra.mxu1 %v574_v14  ;;  %v605_v14 = vld [vmem:[%s1241_s3 + $0x68] sm:$0xff] }
 0x115   : > { %860 = vmatprep.subr.mxu1 %v589_v16  ;;  %v607_v16 = vld [vmem:[%s1241_s3 + $0x78] sm:$0xff] }
 0x116   : > { %861 = vmatpush3.msra.mxu1 %v573_v18 }
 0x117   : > { %862 = vmatprep.subr.mxu1 %v588_v20 }
 0x118   : > { %863 = vmatpush3.msra.mxu1 %v572_v22 }
 0x119   : > { %864 = vmatprep.subr.mxu1 %v587_v24 }
 0x11a   : > { %865 = vmatpush3.msra.mxu1 %v571_v26 }
 0x11b   : > { %866 = vmatprep.subr.mxu1 %v586_v28 }
 0x11c   : > { %867 = vmatpush3.msra.mxu1 %v570_v30 }
 0x11d   : > { %868 = vmatprep.subr.mxu1 %v585_v32 }
 0x11e   : > { %869 = vmatpush3.msra.mxu1 %v569_v44 }
 0x11f   : > { %870 = vmatprep.subr.mxu1 %v584_v45 }
 0x120   : > { %871 = vmatpush3.msra.mxu1 %v568_v47 }
 0x121   : > { %872 = vmatprep.subr.mxu1 %v583_v48 }
 0x122   : > { %873 = vmatpush3.msra.mxu1 %v567_v40 }
 0x123   : > { %874 = vmatprep.subr.mxu1 %v582_v57 }
 0x124   : > { %875 = vmatpush3.msra.mxu1 %v566_v58 }
 0x125   : > { %876 = vmatprep.subr.mxu1 %v581_v59 }
 0x126   : > { %877 = vmatpush3.msra.mxu1 %v565_v60 }
 0x127   : > { %878 = vmatprep.subr.mxu1 %v580_v61 }
 0x128   : > { %879 = vmatpush3.msra.mxu1 %v564_v62 }
 0x129   : > { %880 = vmatprep.subr.mxu1 %v579_v63 }
 0x12a   : > { %881 = vmatpush3.msra.mxu1 %v563_v1 }
 0x12b   : > { %882 = vmatprep.subr.mxu1 %v578_v2 }
 0x12c   : > { %883 = vmatpush3.msra.mxu1 %v562_v3 }
 0x12d   : > { %884 = vmatprep.subr.mxu1 %v577_v4 }
 0x12e   : > { %885 = vmatpush3.msra.mxu1 %v561_v50 }
 0x12f   : > { %886 = vmatprep.subr.mxu1 %v576_v5 }
 0x130   : > { %887 = vmatpush3.msra.mxu1 %v560_v6 }
 0x131   : > { %673 = vmatmul.mubr.f32.vlgmr.msra.gmra.mxu1 %v592_v34 }
 0x132   : > { %677 = vmatprep.mubr.f32.mxu1 %v595_v51 }
 0x135   : > { %678 = vmatmul.mubr.f32.gmra.mxu1 %v594_v35 }
 0x136   : > { %682 = vmatprep.mubr.f32.mxu1 %v597_v0 }
 0x139   : > { %683 = vmatmul.mubr.f32.gmra.mxu1 %v596_v7 }
 0x13a   : > { %687 = vmatprep.mubr.f32.mxu1 %v599_v8 }
 0x13d   : > { %688 = vmatmul.mubr.f32.gmra.mxu1 %v598_v9 }
 0x13e   : > { %692 = vmatprep.mubr.f32.mxu1 %v601_v10 }
 0x141   : > { %693 = vmatmul.mubr.f32.gmra.mxu1 %v600_v11 }
 0x142   : > { %697 = vmatprep.mubr.f32.mxu1 %v603_v12 }
 0x145   : > { %698 = vmatmul.mubr.f32.gmra.mxu1 %v602_v13 }
 0x146   : > { %702 = vmatprep.mubr.f32.mxu1 %v605_v14 }
 0x149   : > { %703 = vmatmul.mubr.f32.gmra.mxu1 %v604_v15 }
 0x14a   : > { %707 = vmatprep.mubr.f32.mxu1 %v607_v16 }
 0x14d   : > { %708 = vmatmul.mubr.f32.gmra.mxu1 %v606_v17 }
 0x1f1   : > { %v888_v18 = vpop.f32.mrf.mxu1 }
 0x1f3   : > { %v889_v19 = vpop.f32.mrf.mxu1 }
 0x1f4   : > { %v890_v20 = vadd.f32 %v889_v19, %v888_v18 }
 0x1f5   : > { %v891_v21 = vpop.f32.mrf.mxu1 }
 0x1f6   : > { %714 = vst.msk [vmem:[%s1217_s10] sm:$0xff] %vm713_vm1, %v890_v20 }
 0x1f7   : > { %v892_v22 = vpop.f32.mrf.mxu1 }
 0x1f8   : > { %v893_v23 = vadd.f32 %v892_v22, %v891_v21 }
 0x1f9   : > { %v894_v24 = vpop.f32.mrf.mxu1 }
 0x1fa   : > { %715 = vst.msk [vmem:[%s1217_s10 + $0x8] sm:$0xff] %vm713_vm1, %v893_v23 }
 0x1fb   : > { %v895_v25 = vpop.f32.mrf.mxu1 }
 0x1fc   : > { %v896_v26 = vadd.f32 %v895_v25, %v894_v24 }
 0x1fd   : > { %v897_v27 = vpop.f32.mrf.mxu1 }
 0x1fe   : > { %716 = vst.msk [vmem:[%s1217_s10 + $0x10] sm:$0xff] %vm713_vm1, %v896_v26 }
 0x1ff   : > { %v898_v28 = vpop.f32.mrf.mxu1 }
 0x200   : > { %v899_v29 = vadd.f32 %v898_v28, %v897_v27 }
 0x201   : > { %v900_v30 = vpop.f32.mrf.mxu1 }
 0x202   : > { %717 = vst.msk [vmem:[%s1217_s10 + $0x18] sm:$0xff] %vm713_vm1, %v899_v29 }
 0x203   : > { %v901_v31 = vpop.f32.mrf.mxu1 }
 0x204   : > { %v902_v32 = vadd.f32 %v901_v31, %v900_v30 }
 0x205   : > { %v903_v33 = vpop.f32.mrf.mxu1 }
 0x206   : > { %718 = vst.msk [vmem:[%s1217_s10 + $0x20] sm:$0xff] %vm713_vm1, %v902_v32 }
 0x207   : > { %v904_v44 = vpop.f32.mrf.mxu1 }
 0x208   : > { %v905_v42 = vadd.f32 %v904_v44, %v903_v33 }
 0x209   : > { %v906_v45 = vpop.f32.mrf.mxu1 }
 0x20a   : > { %719 = vst.msk [vmem:[%s1217_s10 + $0x28] sm:$0xff] %vm713_vm1, %v905_v42 }
 0x20b   : > { %v907_v46 = vpop.f32.mrf.mxu1 }
 0x20c   : > { %v908_v47 = vadd.f32 %v907_v46, %v906_v45 }
 0x20d   : > { %v909_v43 = vpop.f32.mrf.mxu1 }
 0x20e   : > { %720 = vst.msk [vmem:[%s1217_s10 + $0x30] sm:$0xff] %vm713_vm1, %v908_v47 }
 0x20f   : > { %v910_v48 = vpop.f32.mrf.mxu1 }
 0x210   : > { %v911_v49 = vadd.f32 %v910_v48, %v909_v43 }
 0x212   : > { %721 = vst.msk [vmem:[%s1217_s10 + $0x38] sm:$0xff] %vm713_vm1, %v911_v49 }
 0x213 PF: > { %s14_s15 = sadd.s32 1, %s976_s15  }
 0x214   : > { %p11_p4 = scmp.ge.s32.totalorder %s14_s15, 4  }
 0x216   :  { %13 = sbr.rel (!%p11_p4) target bundleno = 1 (0x1), region = 66 }

// kernel: sk_unit_forward.3
= control target key start
LH: loop header
LB: loop body
LE: loop exit
PB: predicated region body
PF: predicated region fallthrough
CT: control target
= control target key end

     0   :  { %s2659_s21 = smov 0   ;;  %s3317_s0 = inlined_call_operand.vmem [shape: f32[2,12,12,32], index: 0, kind: input, shape index: {}]   ;;  %s3318_s1 = inlined_call_operand.vmem [shape: f32[18,32], index: 1, kind: input, shape index: {}]   ;;  %s3319_s2 = inlined_call_operand.vmem [shape: f32[2,32], index: 2, kind: input, shape index: {}]   ;;  %s3320_s3 = inlined_call_operand.vmem [shape: f32[32,32], index: 3, kind: input, shape index: {}]   ;;  %s3321_s4 = inlined_call_operand.vmem [shape: f32[1,32], index: 4, kind: input, shape index: {}]   ;;  %s3322_s5 = inlined_call_operand.vmem [shape: f32[32,64], index: 5, kind: input, shape index: {}]   ;;  %s3323_s6 = inlined_call_operand.vmem [shape: f32[1,64], index: 6, kind: input, shape index: {}]   ;;  %s3324_s7 = inlined_call_operand.vmem [shape: f32[8,64], index: 7, kind: input, shape index: {}]   ;;  %s3325_s8 = inlined_call_operand.vmem [shape: f32[64,8], index: 8, kind: input, shape index: {}]   ;;  %s3326_s9 = inlined_call_operand.vmem [shape: f32[32,64], index: 9, kind: input, shape index: {}]   ;;  %s3327_s10 = inlined_call_operand.vmem [shape: f32[32,16], index: 10, kind: input, shape index: {}]   ;;  %s3328_s11 = inlined_call_operand.vmem [shape: f32[1,16], index: 11, kind: input, shape index: {}]   ;;  %s3329_s12 = inlined_call_operand.vmem [shape: f32[2,2,32,16], index: 12, kind: output, shape index: {}]  }
   0x1 LB: > { %s2124_s22 = sadd.s32 4294967295, %s2588_s21   ;;  %p2128_p0 = scmp.ge.s32.totalorder %s2588_s21, 1  ;;  %s2588_s21 = sphi %s2659_s21, %s22_s21  }
   0x2   : > { %p362_p1 = scmp.lt.s32.totalorder %s2588_s21, 3 }
   0x4   : > { %p363_p2 = pnand %p2128_p0, %p362_p1 }
   0x5   : > { %p404_p3 = scmp.lt.s32.totalorder (!%p363_p2), %s2124_s22, 1  ;;  %s2592_s27 = smov (!%p363_p2), 96  }
   0x6   : > { %366 = sbr.rel (%p363_p2) target bundleno = 1549 (0x60d), region = 68  ;;  %s2593_s28 = smov (!%p363_p2), 32  }
   0xb   : > { %v1008_v0 = vld [vmem:[%s3320_s3 + $0x18] sm:$0xff]  ;;  %v2590_v1 = vmov 0.0   ;;  %v1007_v2 = vld [vmem:[%s3320_s3 + $0x10] sm:$0xff]  ;;  %vm2591_vm0 = vmmov 0   ;;  %s3331_s22 = smov (!%p404_p3, %s2124_s22), 1  ;;  %v1006_v4 = vld [vmem:[%s3320_s3 + $0x8] sm:$0xff] }
   0xc   : > { %2395 = vmatprep.subr.mxu0 %v2590_v1  ;;  %2403 = vmatprep.mubr.msk.f32.mxu0 %vm2591_vm0, %v2590_v1  ;;  %v1087_v3 = vld [vmem:[%s3322_s5 + $0x18] sm:$0xff]  ;;  %s2555_s13 = smul.u32 192, %s3331_s22  ;;  %v1005_v5 = vld [vmem:[%s3320_s3] sm:$0xff]  ;;  %vm982_vm1 = vcmask 261120   ;;  %vm1191_vm2 = vcmask 523264   ;;  %vm1361_vm3 = vcmask 64512  }
   0xd   : > { %2396 = vmatpush3.msra.mxu0 %v1008_v0  ;;  %2406 = vmatprep.subr.mxu1 %v2590_v1  ;;  %v2140_v6 = vld [vmem:[%s3318_s1] ss:$0 sm:$0xff]  ;;  %v2698_v7 = vld [vmem:[%s3318_s1 + $0x3] ss:$0 sm:$0xff]  ;;  %v2149_v8 = vld [vmem:[%s3318_s1 + $0x1] ss:$0 sm:$0xff] }
   0xe   : > { %2397 = vmatprep.subr.mxu0 %v2590_v1  ;;  %2407 = vmatpush3.msra.mxu1 %v1087_v3  ;;  %s2705_s24 = scalar_lea.vmem %s3317_s0, %s2555_s13  ;;  %v2158_v25 = vld [vmem:[%s3318_s1 + $0x2] ss:$0 sm:$0xff]  ;;  %vm1951_vm4 = vcmask 130048  }
   0xf   : > { %2398 = vmatpush3.msra.mxu0 %v1007_v2  ;;  %2408 = vmatprep.subr.mxu1 %v2590_v1  ;;  %v2132_v9 = vld [vmem:[%s2705_s24 + $0x11] sm:$0xff]  ;;  %v2133_v10 = vld [vmem:[%s2705_s24 + $0x21] sm:$0xff] }
  0x10   : > { %2399 = vmatprep.subr.mxu0 %v2590_v1  ;;  %2414 = vmatprep.mubr.msk.f32.mxu1 %vm2591_vm0, %v2590_v1  ;;  %v2714_v11 = vld [vmem:[%s2705_s24 + $0x31] sm:$0xff]  ;;  %v2717_v12 = vld [vmem:[%s2705_s24 + $0x41] sm:$0xff]  ;;  %v428_v15 = vmul.f32 %v2140_v6, %v2132_v9  ;;  %v429_v16 = vmul.f32 %v2140_v6, %v2133_v10  ;;  %v2727_v18 = vmul.f32 %v2698_v7, %v2133_v10 }
  0x11   : > { %2400 = vmatpush3.msra.mxu0 %v1006_v4  ;;  %v2720_v13 = vld [vmem:[%s2705_s24 + $0x51] sm:$0xff]  ;;  %v2723_v14 = vld [vmem:[%s2705_s24 + $0x61] sm:$0xff]  ;;  %v430_v17 = vmul.f32 %v2140_v6, %v2714_v11  ;;  %v431_v21 = vmul.f32 %v2140_v6, %v2717_v12  ;;  %v517_v26 = vmul.f32 %v2698_v7, %v2714_v11  ;;  %v518_v33 = vmul.f32 %v2698_v7, %v2717_v12 }
  0x12   : > { %2401 = vmatprep.subr.mxu0 %v2590_v1  ;;  %v2730_v19 = vld [vmem:[%s2705_s24 + $0x71] sm:$0xff]  ;;  %v2733_v20 = vld [vmem:[%s2705_s24 + $0x81] sm:$0xff]  ;;  %v432_v22 = vmul.f32 %v2140_v6, %v2720_v13  ;;  %v433_v23 = vmul.f32 %v2140_v6, %v2723_v14  ;;  %v519_v40 = vmul.f32 %v2698_v7, %v2720_v13 }
  0x13   : > { %2402 = vmatpush3.msra.mxu0 %v1005_v5  ;;  %v2739_v24 = vld [vmem:[%s2705_s24 + $0x12] sm:$0xff]  ;;  %v434_v27 = vmul.f32 %v2140_v6, %v2730_v19  ;;  %v435_v28 = vmul.f32 %v2140_v6, %v2733_v20  ;;  %v2750_v29 = vld [vmem:[%s2705_s24 + $0x22] sm:$0xff] }
  0x14   : > { %2417 = vmatprep.subr.mxu0 %v2590_v1  ;;  %v2753_v30 = vld [vmem:[%s2705_s24 + $0x32] sm:$0xff]  ;;  %v2756_v31 = vld [vmem:[%s2705_s24 + $0x42] sm:$0xff]  ;;  %v457_v32 = vmul.f32 %v2149_v8, %v2739_v24  ;;  %v458_v37 = vmul.f32 %v2149_v8, %v2750_v29 }
  0x15   : > { %v2762_v34 = vld [vmem:[%s2705_s24 + $0x52] sm:$0xff]  ;;  %v2765_v35 = vld [vmem:[%s2705_s24 + $0x62] sm:$0xff]  ;;  %v459_v38 = vmul.f32 %v2149_v8, %v2753_v30  ;;  %v460_v39 = vmul.f32 %v2149_v8, %v2756_v31 }
  0x16   : > { %v2768_v36 = vld [vmem:[%s2705_s24 + $0x72] sm:$0xff]  ;;  %v2776_v41 = vld [vmem:[%s2705_s24 + $0x82] sm:$0xff]  ;;  %v461_v42 = vmul.f32 %v2149_v8, %v2762_v34  ;;  %v462_v43 = vmul.f32 %v2149_v8, %v2765_v35  ;;  %v465_v45 = vadd.f32 %v457_v32, %v428_v15  ;;  %v466_v49 = vadd.f32 %v458_v37, %v429_v16 }
  0x17   : > { %v463_v44 = vmul.f32 %v2149_v8, %v2768_v36  ;;  %v2150_v46 = vld [vmem:[%s2705_s24 + $0x13] sm:$0xff]  ;;  %v2783_v47 = vld [vmem:[%s2705_s24 + $0x23] sm:$0xff]  ;;  %v464_v48 = vmul.f32 %v2149_v8, %v2776_v41  ;;  %v467_v50 = vadd.f32 %v459_v38, %v430_v17  ;;  %v468_v51 = vadd.f32 %v460_v39, %v431_v21 }
  0x18   : > { %v2787_v52 = vld [vmem:[%s2705_s24 + $0x33] sm:$0xff]  ;;  %v2790_v53 = vld [vmem:[%s2705_s24 + $0x43] sm:$0xff]  ;;  %v469_v55 = vadd.f32 %v461_v42, %v432_v22  ;;  %v470_v56 = vadd.f32 %v462_v43, %v433_v23  ;;  %v486_v61 = vmul.f32 %v2158_v25, %v2150_v46  ;;  %v487_v63 = vmul.f32 %v2158_v25, %v2783_v47 }
  0x19   : > { %v2793_v54 = vld [vmem:[%s2705_s24 + $0x53] sm:$0xff]  ;;  %v471_v57 = vadd.f32 %v463_v44, %v434_v27  ;;  %v2796_v58 = vld [vmem:[%s2705_s24 + $0x63] sm:$0xff]  ;;  %v472_v62 = vadd.f32 %v464_v48, %v435_v28  ;;  %v488_v0 = vmul.f32 %v2158_v25, %v2787_v52  ;;  %v489_v2 = vmul.f32 %v2158_v25, %v2790_v53 }
  0x1a   : > { %v2799_v59 = vld [vmem:[%s2705_s24 + $0x73] sm:$0xff]  ;;  %v2802_v60 = vld [vmem:[%s2705_s24 + $0x83] sm:$0xff]  ;;  %v490_v3 = vmul.f32 %v2158_v25, %v2793_v54  ;;  %v491_v4 = vmul.f32 %v2158_v25, %v2796_v58  ;;  %v494_v9 = vadd.f32 %v486_v61, %v465_v45  ;;  %v495_v10 = vadd.f32 %v487_v63, %v466_v49 }
  0x1b   : > { %v492_v5 = vmul.f32 %v2158_v25, %v2799_v59  ;;  %v493_v6 = vmul.f32 %v2158_v25, %v2802_v60  ;;  %v2812_v8 = vld [vmem:[%s2705_s24 + $0x91] sm:$0xff]  ;;  %v496_v15 = vadd.f32 %v488_v0, %v467_v50  ;;  %v497_v16 = vadd.f32 %v489_v2, %v468_v51  ;;  %v2176_v37 = vld [vmem:[%s3318_s1 + $0x4] ss:$0 sm:$0xff] }
  0x1c   : > { %v498_v17 = vadd.f32 %v490_v3, %v469_v55  ;;  %v499_v21 = vadd.f32 %v491_v4, %v470_v56  ;;  %v520_v27 = vmul.f32 %v2698_v7, %v2723_v14  ;;  %v521_v28 = vmul.f32 %v2698_v7, %v2730_v19  ;;  %v2827_v44 = vld [vmem:[%s2705_s24 + $0x92] sm:$0xff]  ;;  %v2185_v56 = vld [vmem:[%s3318_s1 + $0x5] ss:$0 sm:$0xff] }
  0x1d   : > { %v500_v22 = vadd.f32 %v492_v5, %v471_v57  ;;  %v501_v23 = vadd.f32 %v493_v6, %v472_v62  ;;  %v522_v25 = vmul.f32 %v2698_v7, %v2733_v20  ;;  %v523_v32 = vmul.f32 %v2698_v7, %v2812_v8  ;;  %v2841_v0 = vld [vmem:[%s2705_s24 + $0x93] sm:$0xff] }
  0x1e   : > { %v524_v38 = vadd.f32 %v2727_v18, %v494_v9  ;;  %v525_v39 = vadd.f32 %v517_v26, %v495_v10  ;;  %v526_v42 = vadd.f32 %v518_v33, %v496_v15  ;;  %v527_v43 = vadd.f32 %v519_v40, %v497_v16 }
  0x1f   : > { %v528_v45 = vadd.f32 %v520_v27, %v498_v17  ;;  %v529_v46 = vadd.f32 %v521_v28, %v499_v21  ;;  %v530_v48 = vadd.f32 %v522_v25, %v500_v22  ;;  %v531_v49 = vadd.f32 %v523_v32, %v501_v23  ;;  %v2194_v23 = vld [vmem:[%s3318_s1 + $0x6] ss:$0 sm:$0xff] }
  0x20   : > { %v545_v50 = vmul.f32 %v2176_v37, %v2750_v29  ;;  %v546_v7 = vmul.f32 %v2176_v37, %v2753_v30  ;;  %v547_v51 = vmul.f32 %v2176_v37, %v2756_v31  ;;  %v548_v55 = vmul.f32 %v2176_v37, %v2762_v34  ;;  %v2193_v32 = vld [vmem:[%s2705_s24 + $0xa1] sm:$0xff] }
  0x21   : > { %v549_v18 = vmul.f32 %v2176_v37, %v2765_v35  ;;  %v550_v26 = vmul.f32 %v2176_v37, %v2768_v36  ;;  %v551_v33 = vmul.f32 %v2176_v37, %v2776_v41  ;;  %v552_v40 = vmul.f32 %v2176_v37, %v2827_v44 }
  0x22   : > { %v553_v57 = vadd.f32 %v545_v50, %v524_v38  ;;  %v554_v61 = vadd.f32 %v546_v7, %v525_v39  ;;  %v555_v62 = vadd.f32 %v547_v51, %v526_v42  ;;  %v556_v63 = vadd.f32 %v548_v55, %v527_v43  ;;  %v2203_v55 = vld [vmem:[%s3318_s1 + $0x7] ss:$0 sm:$0xff] }
  0x23   : > { %v557_v2 = vadd.f32 %v549_v18, %v528_v45  ;;  %v558_v3 = vadd.f32 %v550_v26, %v529_v46  ;;  %v559_v4 = vadd.f32 %v551_v33, %v530_v48  ;;  %v560_v5 = vadd.f32 %v552_v40, %v531_v49 }
  0x24   : > { %v574_v6 = vmul.f32 %v2185_v56, %v2783_v47  ;;  %v575_v9 = vmul.f32 %v2185_v56, %v2787_v52  ;;  %v576_v10 = vmul.f32 %v2185_v56, %v2790_v53  ;;  %v577_v15 = vmul.f32 %v2185_v56, %v2793_v54 }
  0x25   : > { %v578_v16 = vmul.f32 %v2185_v56, %v2796_v58  ;;  %v579_v17 = vmul.f32 %v2185_v56, %v2799_v59  ;;  %v580_v21 = vmul.f32 %v2185_v56, %v2802_v60  ;;  %v581_v22 = vmul.f32 %v2185_v56, %v2841_v0  ;;  %v2866_v56 = vld [vmem:[%s2705_s24 + $0xa2] sm:$0xff] }
  0x26   : > { %v582_v27 = vadd.f32 %v574_v6, %v553_v57  ;;  %v583_v47 = vadd.f32 %v575_v9, %v554_v61  ;;  %v584_v28 = vadd.f32 %v576_v10, %v555_v62  ;;  %v585_v25 = vadd.f32 %v577_v15, %v556_v63  ;;  %v2211_v10 = vld [vmem:[%s2705_s24 + $0xa3] sm:$0xff] }
  0x27   : > { %v586_v37 = vadd.f32 %v578_v16, %v557_v2  ;;  %v587_v38 = vadd.f32 %v579_v17, %v558_v3  ;;  %v588_v39 = vadd.f32 %v580_v21, %v559_v4  ;;  %v589_v42 = vadd.f32 %v581_v22, %v560_v5  ;;  %v2212_v3 = vld [vmem:[%s3318_s1 + $0x8] ss:$0 sm:$0xff] }
  0x28   : > { %v604_v43 = vmul.f32 %v2194_v23, %v2714_v11  ;;  %v605_v45 = vmul.f32 %v2194_v23, %v2717_v12  ;;  %v606_v46 = vmul.f32 %v2194_v23, %v2720_v13  ;;  %v607_v48 = vmul.f32 %v2194_v23, %v2723_v14 }
  0x29   : > { %v608_v49 = vmul.f32 %v2194_v23, %v2730_v19  ;;  %v609_v50 = vmul.f32 %v2194_v23, %v2733_v20  ;;  %v610_v7 = vmul.f32 %v2194_v23, %v2812_v8  ;;  %v611_v51 = vmul.f32 %v2194_v23, %v2193_v32 }
  0x2a   : > { %v612_v18 = vadd.f32 %v604_v43, %v582_v27  ;;  %v613_v11 = vadd.f32 %v605_v45, %v583_v47  ;;  %v614_v26 = vadd.f32 %v606_v46, %v584_v28  ;;  %v615_v12 = vadd.f32 %v607_v48, %v585_v25  ;;  %v699_v48 = vld [vmem:[%s2705_s24] sm:$0xff] }
  0x2b   : > { %v616_v33 = vadd.f32 %v608_v49, %v586_v37  ;;  %v617_v40 = vadd.f32 %v609_v50, %v587_v38  ;;  %v618_v13 = vadd.f32 %v610_v7, %v588_v39  ;;  %v619_v14 = vadd.f32 %v611_v51, %v589_v42  ;;  %v2213_v38 = vld [vmem:[%s3319_s2] ss:$0 sm:$0xff]  ;;  %v700_v49 = vld [vmem:[%s2705_s24 + $0x10] sm:$0xff]  ;;  %v2214_v50 = vld [vmem:[%s3318_s1 + $0x9] ss:$0 sm:$0xff] }
  0x2c   : > { %v633_v19 = vmul.f32 %v2203_v55, %v2753_v30  ;;  %v634_v20 = vmul.f32 %v2203_v55, %v2756_v31  ;;  %v635_v8 = vmul.f32 %v2203_v55, %v2762_v34  ;;  %v636_v57 = vmul.f32 %v2203_v55, %v2765_v35  ;;  %v2896_v7 = vld [vmem:[%s2705_s24 + $0x20] sm:$0xff]  ;;  %v2899_v51 = vld [vmem:[%s2705_s24 + $0x30] sm:$0xff] }
  0x2d   : > { %v637_v61 = vmul.f32 %v2203_v55, %v2768_v36  ;;  %v638_v62 = vmul.f32 %v2203_v55, %v2776_v41  ;;  %v639_v63 = vmul.f32 %v2203_v55, %v2827_v44  ;;  %v640_v2 = vmul.f32 %v2203_v55, %v2866_v56  ;;  %v2902_v55 = vld [vmem:[%s2705_s24 + $0x40] sm:$0xff] }
  0x2e   : > { %v641_v4 = vadd.f32 %v633_v19, %v612_v18  ;;  %v642_v5 = vadd.f32 %v634_v20, %v613_v11  ;;  %v643_v6 = vadd.f32 %v635_v8, %v614_v26  ;;  %v644_v9 = vadd.f32 %v636_v57, %v615_v12  ;;  %v2215_v18 = vld [vmem:[%s3318_s1 + $0xa] ss:$0 sm:$0xff] }
  0x2f   : > { %v645_v15 = vadd.f32 %v637_v61, %v616_v33  ;;  %v646_v16 = vadd.f32 %v638_v62, %v617_v40  ;;  %v647_v17 = vadd.f32 %v639_v63, %v618_v13  ;;  %v648_v21 = vadd.f32 %v640_v2, %v619_v14  ;;  %v2916_v40 = vld [vmem:[%s2705_s24 + $0x50] sm:$0xff]  ;;  %v2919_v13 = vld [vmem:[%s2705_s24 + $0x60] sm:$0xff] }
  0x30   : > { %v662_v22 = vmul.f32 %v2212_v3, %v2787_v52  ;;  %v663_v23 = vmul.f32 %v2212_v3, %v2790_v53  ;;  %v664_v27 = vmul.f32 %v2212_v3, %v2793_v54  ;;  %v665_v47 = vmul.f32 %v2212_v3, %v2796_v58  ;;  %v2922_v14 = vld [vmem:[%s2705_s24 + $0x70] sm:$0xff]  ;;  %v728_v61 = vld [vmem:[%s2705_s24 + $0x2] sm:$0xff] }
  0x31   : > { %v666_v28 = vmul.f32 %v2212_v3, %v2799_v59  ;;  %v667_v25 = vmul.f32 %v2212_v3, %v2802_v60  ;;  %v668_v32 = vmul.f32 %v2212_v3, %v2841_v0  ;;  %v669_v37 = vmul.f32 %v2212_v3, %v2211_v10 }
  0x32   : > { %v670_v52 = vadd.f32 %v662_v22, %v641_v4  ;;  %v671_v53 = vadd.f32 %v663_v23, %v642_v5  ;;  %v672_v54 = vadd.f32 %v664_v27, %v643_v6  ;;  %v673_v58 = vadd.f32 %v665_v47, %v644_v9  ;;  %v758_v22 = vld [vmem:[%s2705_s24 + $0x14] sm:$0xff]  ;;  %v2216_v23 = vld [vmem:[%s3318_s1 + $0xb] ss:$0 sm:$0xff] }
  0x33   : > { %v674_v39 = vadd.f32 %v666_v28, %v645_v15  ;;  %v675_v59 = vadd.f32 %v667_v25, %v646_v16  ;;  %v676_v42 = vadd.f32 %v668_v32, %v647_v17  ;;  %v677_v60 = vadd.f32 %v669_v37, %v648_v21  ;;  %v757_v21 = vld [vmem:[%s2705_s24 + $0x4] sm:$0xff]  ;;  %v2955_v32 = vld [vmem:[%s2705_s24 + $0x34] sm:$0xff] }
  0x34   : > { %v683_v43 = vadd.f32 %v2213_v38, %v670_v52  ;;  %v684_v0 = vadd.f32 %v2213_v38, %v671_v53  ;;  %v685_v45 = vadd.f32 %v2213_v38, %v672_v54  ;;  %v686_v46 = vadd.f32 %v2213_v38, %v673_v58  ;;  %v2952_v25 = vld [vmem:[%s2705_s24 + $0x24] sm:$0xff]  ;;  %v2961_v58 = vld [vmem:[%s2705_s24 + $0x54] sm:$0xff] }
  0x35   : > { %v2907_v11 = vadd.f32 %v2213_v38, %v674_v39  ;;  %v2909_v26 = vadd.f32 %v2213_v38, %v675_v59  ;;  %v2911_v12 = vadd.f32 %v2213_v38, %v676_v42  ;;  %v2913_v33 = vadd.f32 %v2213_v38, %v677_v60  ;;  %v2958_v37 = vld [vmem:[%s2705_s24 + $0x44] sm:$0xff]  ;;  %v2967_v59 = vld [vmem:[%s2705_s24 + $0x74] sm:$0xff] }
  0x36   : > { %v2924_v19 = vmax.f32 %v683_v43, 0.0  ;;  %v2926_v20 = vmax.f32 %v684_v0, 0.0  ;;  %v2928_v8 = vmax.f32 %v685_v45, 0.0  ;;  %v2930_v57 = vmax.f32 %v686_v46, 0.0  ;;  %v2964_v39 = vld [vmem:[%s2705_s24 + $0x64] sm:$0xff] }
  0x37   : > { %v712_v62 = vmul.f32 %v2214_v50, %v699_v48  ;;  %v713_v63 = vmul.f32 %v2214_v50, %v700_v49  ;;  %v714_v2 = vmul.f32 %v2214_v50, %v2896_v7  ;;  %v715_v3 = vmul.f32 %v2214_v50, %v2899_v51 }
  0x38   : > { %v716_v4 = vmul.f32 %v2214_v50, %v2902_v55  ;;  %v717_v5 = vmul.f32 %v2214_v50, %v2916_v40  ;;  %v718_v6 = vmul.f32 %v2214_v50, %v2919_v13  ;;  %v719_v9 = vmul.f32 %v2214_v50, %v2922_v14 }
  0x39   : > { %v741_v10 = vmul.f32 %v2215_v18, %v728_v61  ;;  %v742_v15 = vmul.f32 %v2215_v18, %v2739_v24  ;;  %v743_v16 = vmul.f32 %v2215_v18, %v2750_v29  ;;  %v744_v17 = vmul.f32 %v2215_v18, %v2753_v30 }
  0x3a   : > { %v745_v27 = vmul.f32 %v2215_v18, %v2756_v31  ;;  %v746_v47 = vmul.f32 %v2215_v18, %v2762_v34  ;;  %v747_v28 = vmul.f32 %v2215_v18, %v2765_v35  ;;  %v748_v24 = vmul.f32 %v2215_v18, %v2768_v36 }
  0x3b   : > { %v749_v38 = vadd.f32 %v741_v10, %v712_v62  ;;  %v750_v52 = vadd.f32 %v742_v15, %v713_v63  ;;  %v751_v53 = vadd.f32 %v743_v16, %v714_v2  ;;  %v752_v54 = vadd.f32 %v744_v17, %v715_v3  ;;  %v2225_v63 = vld [vmem:[%s3318_s1 + $0xc] ss:$0 sm:$0xff] }
  0x3c   : > { %v753_v42 = vadd.f32 %v745_v27, %v716_v4  ;;  %v754_v60 = vadd.f32 %v746_v47, %v717_v5  ;;  %v755_v43 = vadd.f32 %v747_v28, %v718_v6  ;;  %v756_v0 = vadd.f32 %v748_v24, %v719_v9  ;;  %v2979_v6 = vld [vmem:[%s2705_s24 + $0x80] sm:$0xff]  ;;  %v2982_v9 = vld [vmem:[%s2705_s24 + $0x90] sm:$0xff] }
  0x3d   : > { %v770_v45 = vmul.f32 %v2216_v23, %v757_v21  ;;  %v771_v46 = vmul.f32 %v2216_v23, %v758_v22  ;;  %v772_v48 = vmul.f32 %v2216_v23, %v2952_v25  ;;  %v773_v49 = vmul.f32 %v2216_v23, %v2955_v32 }
  0x3e   : > { %v774_v50 = vmul.f32 %v2216_v23, %v2958_v37  ;;  %v775_v18 = vmul.f32 %v2216_v23, %v2961_v58  ;;  %v776_v61 = vmul.f32 %v2216_v23, %v2964_v39  ;;  %v777_v62 = vmul.f32 %v2216_v23, %v2967_v59 }
  0x3f   : > { %v778_v2 = vadd.f32 %v770_v45, %v749_v38  ;;  %v779_v3 = vadd.f32 %v771_v46, %v750_v52  ;;  %v780_v4 = vadd.f32 %v772_v48, %v751_v53  ;;  %v781_v5 = vadd.f32 %v773_v49, %v752_v54  ;;  %v2226_v52 = vld [vmem:[%s3318_s1 + $0xd] ss:$0 sm:$0xff] }
  0x40   : > { %v782_v10 = vadd.f32 %v774_v50, %v753_v42  ;;  %v783_v15 = vadd.f32 %v775_v18, %v754_v60  ;;  %v784_v16 = vadd.f32 %v776_v61, %v755_v43  ;;  %v785_v17 = vadd.f32 %v777_v62, %v756_v0 }
  0x41   : > { %v799_v21 = vmul.f32 %v2225_v63, %v2896_v7  ;;  %v800_v22 = vmul.f32 %v2225_v63, %v2899_v51  ;;  %v801_v23 = vmul.f32 %v2225_v63, %v2902_v55  ;;  %v802_v27 = vmul.f32 %v2225_v63, %v2916_v40 }
  0x42   : > { %v803_v47 = vmul.f32 %v2225_v63, %v2919_v13  ;;  %v804_v28 = vmul.f32 %v2225_v63, %v2922_v14  ;;  %v805_v24 = vmul.f32 %v2225_v63, %v2979_v6  ;;  %v806_v38 = vmul.f32 %v2225_v63, %v2982_v9  ;;  %v2235_v63 = vld [vmem:[%s3318_s1 + $0xe] ss:$0 sm:$0xff] }
  0x43   : > { %v807_v53 = vadd.f32 %v799_v21, %v778_v2  ;;  %v808_v7 = vadd.f32 %v800_v22, %v779_v3  ;;  %v809_v54 = vadd.f32 %v801_v23, %v780_v4  ;;  %v810_v51 = vadd.f32 %v802_v27, %v781_v5  ;;  %v3007_v4 = vld [vmem:[%s2705_s24 + $0x84] sm:$0xff]  ;;  %v3010_v5 = vld [vmem:[%s2705_s24 + $0x94] sm:$0xff] }
  0x44   : > { %v811_v42 = vadd.f32 %v803_v47, %v782_v10  ;;  %v812_v60 = vadd.f32 %v804_v28, %v783_v15  ;;  %v813_v43 = vadd.f32 %v805_v24, %v784_v16  ;;  %v814_v0 = vadd.f32 %v806_v38, %v785_v17 }
  0x45   : > { %v820_v45 = vmul.f32 %v2226_v52, %v2750_v29  ;;  %v821_v46 = vmul.f32 %v2226_v52, %v2753_v30  ;;  %v822_v48 = vmul.f32 %v2226_v52, %v2756_v31  ;;  %v823_v49 = vmul.f32 %v2226_v52, %v2762_v34 }
  0x46   : > { %v824_v50 = vmul.f32 %v2226_v52, %v2765_v35  ;;  %v825_v18 = vmul.f32 %v2226_v52, %v2768_v36  ;;  %v826_v61 = vmul.f32 %v2226_v52, %v2776_v41  ;;  %v827_v62 = vmul.f32 %v2226_v52, %v2827_v44  ;;  %v2244_v52 = vld [vmem:[%s3318_s1 + $0xf] ss:$0 sm:$0xff] }
  0x47   : > { %v828_v2 = vadd.f32 %v820_v45, %v807_v53  ;;  %v829_v29 = vadd.f32 %v821_v46, %v808_v7  ;;  %v830_v3 = vadd.f32 %v822_v48, %v809_v54  ;;  %v831_v30 = vadd.f32 %v823_v49, %v810_v51  ;;  %v2242_v54 = vld [vmem:[%s2705_s24 + $0xa0] sm:$0xff]  ;;  %v2243_v51 = vld [vmem:[%s2705_s24 + $0xb0] sm:$0xff] }
  0x48   : > { %v832_v10 = vadd.f32 %v824_v50, %v811_v42  ;;  %v833_v15 = vadd.f32 %v825_v18, %v812_v60  ;;  %v834_v16 = vadd.f32 %v826_v61, %v813_v43  ;;  %v835_v17 = vadd.f32 %v827_v62, %v814_v0 }
  0x49   : > { %v849_v21 = vmul.f32 %v2235_v63, %v2952_v25  ;;  %v850_v22 = vmul.f32 %v2235_v63, %v2955_v32  ;;  %v851_v23 = vmul.f32 %v2235_v63, %v2958_v37  ;;  %v852_v27 = vmul.f32 %v2235_v63, %v2961_v58 }
  0x4a   : > { %v853_v47 = vmul.f32 %v2235_v63, %v2964_v39  ;;  %v854_v28 = vmul.f32 %v2235_v63, %v2967_v59  ;;  %v855_v24 = vmul.f32 %v2235_v63, %v3007_v4  ;;  %v856_v38 = vmul.f32 %v2235_v63, %v3010_v5  ;;  %v2253_v63 = vld [vmem:[%s3318_s1 + $0x10] ss:$0 sm:$0xff] }
  0x4b   : > { %v857_v53 = vadd.f32 %v849_v21, %v828_v2  ;;  %v858_v25 = vadd.f32 %v850_v22, %v829_v29  ;;  %v859_v7 = vadd.f32 %v851_v23, %v830_v3  ;;  %v860_v32 = vadd.f32 %v852_v27, %v831_v30  ;;  %v2252_v30 = vld [vmem:[%s2705_s24 + $0xb2] sm:$0xff]  ;;  %v2262_v27 = vld [vmem:[%s3318_s1 + $0x11] ss:$0 sm:$0xff] }
  0x4c   : > { %v861_v42 = vadd.f32 %v853_v47, %v832_v10  ;;  %v862_v60 = vadd.f32 %v854_v28, %v833_v15  ;;  %v863_v43 = vadd.f32 %v855_v24, %v834_v16  ;;  %v864_v0 = vadd.f32 %v856_v38, %v835_v17  ;;  %v2261_v38 = vld [vmem:[%s2705_s24 + $0xb4] sm:$0xff] }
  0x4d   : > { %v879_v45 = vmul.f32 %v2244_v52, %v2902_v55  ;;  %v880_v46 = vmul.f32 %v2244_v52, %v2916_v40  ;;  %v881_v48 = vmul.f32 %v2244_v52, %v2919_v13  ;;  %v882_v49 = vmul.f32 %v2244_v52, %v2922_v14 }
  0x4e   : > { %v883_v50 = vmul.f32 %v2244_v52, %v2979_v6  ;;  %v884_v18 = vmul.f32 %v2244_v52, %v2982_v9  ;;  %v885_v61 = vmul.f32 %v2244_v52, %v2242_v54  ;;  %v886_v62 = vmul.f32 %v2244_v52, %v2243_v51 }
  0x4f   : > { %v887_v2 = vadd.f32 %v879_v45, %v857_v53  ;;  %v888_v29 = vadd.f32 %v880_v46, %v858_v25  ;;  %v889_v3 = vadd.f32 %v881_v48, %v859_v7  ;;  %v890_v55 = vadd.f32 %v882_v49, %v860_v32 }
  0x50   : > { %v891_v40 = vadd.f32 %v883_v50, %v861_v42  ;;  %v892_v10 = vadd.f32 %v884_v18, %v862_v60  ;;  %v893_v13 = vadd.f32 %v885_v61, %v863_v43  ;;  %v894_v14 = vadd.f32 %v886_v62, %v864_v0  ;;  %v2263_v42 = vld [vmem:[%s3319_s2 + $0x1] ss:$0 sm:$0xff] }
  0x51   : > { %v908_v6 = vmul.f32 %v2253_v63, %v2756_v31  ;;  %v909_v9 = vmul.f32 %v2253_v63, %v2762_v34  ;;  %v910_v15 = vmul.f32 %v2253_v63, %v2765_v35  ;;  %v911_v16 = vmul.f32 %v2253_v63, %v2768_v36  ;;  %v2260_v34 = vld [vmem:[%s2705_s24 + $0xa4] sm:$0xff] }
  0x52   : > { %v912_v17 = vmul.f32 %v2253_v63, %v2776_v41  ;;  %v913_v21 = vmul.f32 %v2253_v63, %v2827_v44  ;;  %v914_v22 = vmul.f32 %v2253_v63, %v2866_v56  ;;  %v915_v23 = vmul.f32 %v2253_v63, %v2252_v30 }
  0x53   : > { %v916_v47 = vadd.f32 %v908_v6, %v887_v2  ;;  %v917_v28 = vadd.f32 %v909_v9, %v888_v29  ;;  %v918_v31 = vadd.f32 %v910_v15, %v889_v3  ;;  %v919_v24 = vadd.f32 %v911_v16, %v890_v55 }
  0x54   : > { %v920_v35 = vadd.f32 %v912_v17, %v891_v40  ;;  %v921_v52 = vadd.f32 %v913_v21, %v892_v10  ;;  %v922_v36 = vadd.f32 %v914_v22, %v893_v13  ;;  %v923_v53 = vadd.f32 %v915_v23, %v894_v14 }
  0x55   : > { %v937_v41 = vmul.f32 %v2262_v27, %v2958_v37  ;;  %v938_v44 = vmul.f32 %v2262_v27, %v2961_v58  ;;  %v939_v56 = vmul.f32 %v2262_v27, %v2964_v39  ;;  %v940_v25 = vmul.f32 %v2262_v27, %v2967_v59 }
  0x56   : > { %v941_v7 = vmul.f32 %v2262_v27, %v3007_v4  ;;  %v942_v32 = vmul.f32 %v2262_v27, %v3010_v5  ;;  %v943_v54 = vmul.f32 %v2262_v27, %v2260_v34  ;;  %v944_v51 = vmul.f32 %v2262_v27, %v2261_v38 }
  0x57   : > { %v945_v60 = vadd.f32 %v937_v41, %v916_v47  ;;  %v946_v43 = vadd.f32 %v938_v44, %v917_v28  ;;  %v947_v0 = vadd.f32 %v939_v56, %v918_v31  ;;  %v948_v37 = vadd.f32 %v940_v25, %v919_v24 }
  0x58   : > { %v949_v45 = vadd.f32 %v941_v7, %v920_v35  ;;  %v950_v58 = vadd.f32 %v942_v32, %v921_v52  ;;  %v951_v46 = vadd.f32 %v943_v54, %v922_v36  ;;  %v952_v39 = vadd.f32 %v944_v51, %v923_v53 }
  0x59   : > { %v958_v48 = vadd.f32 %v2263_v42, %v945_v60  ;;  %v959_v59 = vadd.f32 %v2263_v42, %v946_v43  ;;  %v960_v49 = vadd.f32 %v2263_v42, %v947_v0  ;;  %v961_v4 = vadd.f32 %v2263_v42, %v948_v37  ;;  %v1085_v60 = vld [vmem:[%s3322_s5 + $0x8] sm:$0xff]  ;;  %v1084_v43 = vld [vmem:[%s3322_s5] sm:$0xff] }
  0x5a   : > { %v3057_v5 = vmax.f32 %v2907_v11, 0.0  ;;  %v962_v50 = vadd.f32 %v2263_v42, %v949_v45  ;;  %v963_v18 = vadd.f32 %v2263_v42, %v950_v58  ;;  %v964_v61 = vadd.f32 %v2263_v42, %v951_v46  ;;  %v1190_v0 = vld [vmem:[%s3324_s7] sm:$0xff] }
  0x5b   : > { %v3059_v62 = vmax.f32 %v958_v48, 0.0  ;;  %v3061_v63 = vmax.f32 %v959_v59, 0.0  ;;  %v3063_v2 = vmax.f32 %v960_v49, 0.0  ;;  %v3065_v29 = vmax.f32 %v961_v4, 0.0  ;;  %v1009_v37 = vld [vmem:[%s3321_s4] sm:$0x1] }
  0x5c   : > { %v3068_v3 = vmax.f32 %v2909_v26, 0.0  ;;  %v965_v55 = vadd.f32 %v2263_v42, %v952_v39  ;;  %v3070_v30 = vmax.f32 %v962_v50, 0.0  ;;  %v3072_v40 = vmax.f32 %v963_v18, 0.0  ;;  %v1086_v42 = vld [vmem:[%s3322_s5 + $0x10] sm:$0xff]  ;;  %v1088_v49 = vld [vmem:[%s3323_s6] sm:$0x1] }
  0x5d   : > { %v974_v11 = vadd.f32 %v3059_v62, %v2924_v19  ;;  %v975_v10 = vadd.f32 %v3061_v63, %v2926_v20  ;;  %v976_v13 = vadd.f32 %v3063_v2, %v2928_v8  ;;  %v977_v14 = vadd.f32 %v3065_v29, %v2930_v57  ;;  %2409 = vmatpush3.msra.mxu1 %v1086_v42 }
  0x5e   : > { %v3083_v26 = vmax.f32 %v2911_v12, 0.0  ;;  %v3085_v6 = vmax.f32 %v964_v61, 0.0  ;;  %v978_v9 = vadd.f32 %v3070_v30, %v3057_v5  ;;  %v3093_v22 = vmax.f32 %v2913_v33, 0.0  ;;  %2410 = vmatprep.subr.mxu1 %v2590_v1 }
  0x5f   : > { %v983_v15 = vsel %vm982_vm1, %v974_v11, 0.0  ;;  %v984_v16 = vsel %vm982_vm1, %v975_v10, 0.0  ;;  %v986_v17 = vsel %vm982_vm1, %v976_v13, 0.0  ;;  %v3095_v23 = vmax.f32 %v965_v55, 0.0  ;;  %2411 = vmatpush3.msra.mxu1 %v1085_v60 }
  0x60   : > { %v985_v21 = vadd.f32 %v984_v16, %v983_v15  ;;  %v979_v12 = vadd.f32 %v3072_v40, %v3068_v3  ;;  %v988_v27 = vsel %vm982_vm1, %v977_v14, 0.0  ;;  %v980_v28 = vadd.f32 %v3085_v6, %v3083_v26  ;;  %2412 = vmatprep.subr.mxu1 %v2590_v1 }
  0x61   : > { %v990_v31 = vsel %vm982_vm1, %v978_v9, 0.0  ;;  %v981_v34 = vadd.f32 %v3095_v23, %v3093_v22  ;;  %2413 = vmatpush3.msra.mxu1 %v1084_v43 }
  0x62   : > { %v987_v47 = vadd.f32 %v986_v17, %v985_v21  ;;  %v992_v33 = vsel %vm982_vm1, %v979_v12, 0.0  ;;  %v994_v35 = vsel %vm982_vm1, %v980_v28, 0.0  ;;  %2436 = vmatprep.subr.mxu1 %v2590_v1 }
  0x63   : > { %v996_v36 = vsel %vm982_vm1, %v981_v34, 0.0 }
  0x64   : > { %v989_v24 = vadd.f32 %v988_v27, %v987_v47 }
  0x66   : > { %v991_v38 = vadd.f32 %v990_v31, %v989_v24 }
  0x68   : > { %v993_v52 = vadd.f32 %v992_v33, %v991_v38 }
  0x6a   : > { %v995_v53 = vadd.f32 %v994_v35, %v993_v52 }
  0x6c   : > { %v997_v41 = vadd.f32 %v996_v36, %v995_v53  ;;  %v1351_v53 = vld [vmem:[%s3325_s8] sm:$0xff] }
  0x6e   : > { %v998_v44 = vrot.slane %v997_v41, 4 }
  0x70   : > { %v999_v56 = vadd.f32 %v998_v44, %v997_v41  ;;  %v1352_v41 = vld [vmem:[%s3325_s8 + $0x8] sm:$0xff]  ;;  %v1353_v44 = vld [vmem:[%s3325_s8 + $0x10] sm:$0xff] }
  0x72   : > { %v1000_v25 = vrot.slane %v999_v56, 2 }
  0x74   : > { %v1001_v7 = vadd.f32 %v1000_v25, %v999_v56  ;;  %v1354_v56 = vld [vmem:[%s3325_s8 + $0x18] sm:$0xff]  ;;  %v1355_v25 = vld [vmem:[%s3325_s8 + $0x20] sm:$0xff] }
  0x76   : > { %v1002_v32 = vrot.slane %v1001_v7, 1 }
  0x78   : > { %v1003_v54 = vadd.f32 %v1002_v32, %v1001_v7  ;;  %v1356_v7 = vld [vmem:[%s3325_s8 + $0x28] sm:$0xff]  ;;  %v1357_v32 = vld [vmem:[%s3325_s8 + $0x30] sm:$0xff] }
  0x7a   : > { %v1004_v51 = vmul.f32 0.015625, %v1003_v54 }
  0x7c   : > { %2404 = vmatmul.mubr.msk.f32.vlgmr.msra.gmra.mxu0 %vm982_vm1, %v1004_v51  ;;  %v1358_v51 = vld [vmem:[%s3325_s8 + $0x38] sm:$0xff] }
  0x7d   : > { %2418 = vmatpush3.msra.mxu0 %v3093_v22  ;;  %2433 = vmatprep.mubr.msk.f32.mxu0 %vm2591_vm0, %v2590_v1 }
  0x7e   : > { %2419 = vmatprep.subr.mxu0 %v2590_v1 }
  0x7f   : > { %2420 = vmatpush3.msra.mxu0 %v3083_v26 }
  0x80   : > { %2421 = vmatprep.subr.mxu0 %v2590_v1 }
  0x81   : > { %2422 = vmatpush3.msra.mxu0 %v3068_v3 }
  0x82   : > { %2423 = vmatprep.subr.mxu0 %v2590_v1 }
  0x83   : > { %2424 = vmatpush3.msra.mxu0 %v3057_v5 }
  0x84   : > { %2425 = vmatprep.subr.mxu0 %v2590_v1 }
  0x85   : > { %2426 = vmatpush3.msra.mxu0 %v2930_v57 }
  0x86   : > { %2427 = vmatprep.subr.mxu0 %v2590_v1 }
  0x87   : > { %2428 = vmatpush3.msra.mxu0 %v2928_v8 }
  0x88   : > { %2429 = vmatprep.subr.mxu0 %v2590_v1 }
  0x89   : > { %2430 = vmatpush3.msra.mxu0 %v2926_v20 }
  0x8a   : > { %2431 = vmatprep.subr.mxu0 %v2590_v1 }
  0x8b   : > { %2432 = vmatpush3.msra.mxu0 %v2924_v19 }
  0x8c   : > { %2434 = vmatmul.mubr.msk.f32.vlgmr.msra.gmra.mxu0 %vm1191_vm2, %v1190_v0 }
  0x8d   : > { %2457 = vmatprep.mubr.msk.f32.mxu0 %vm1361_vm3, %v1351_v53 }
 0x13c   : > { %v1079_v45 = vpop.f32.mrf.mxu0 }
 0x13d   : > { %v1080_v58 = vadd.f32 %v1079_v45, %v1009_v37 }
 0x13e   : > { %v2405_v46 = vpop.f32.mrf.mxu0 }
 0x13f   : > { %v1083_v39 = vmax.f32 %v1080_v58, 0.0 }
 0x141   : > { %2415 = vmatmul.mubr.msk.f32.vlgmr.msra.gmra.mxu1 %vm982_vm1, %v1083_v39 }
 0x142   : > { %2437 = vmatpush3.msra.mxu1 %v3095_v23  ;;  %2452 = vmatprep.mubr.msk.f32.mxu1 %vm2591_vm0, %v2590_v1 }
 0x143   : > { %2438 = vmatprep.subr.mxu1 %v2590_v1 }
 0x144   : > { %2439 = vmatpush3.msra.mxu1 %v3085_v6 }
 0x145   : > { %2440 = vmatprep.subr.mxu1 %v2590_v1 }
 0x146   : > { %2441 = vmatpush3.msra.mxu1 %v3072_v40 }
 0x147   : > { %2442 = vmatprep.subr.mxu1 %v2590_v1 }
 0x148   : > { %2443 = vmatpush3.msra.mxu1 %v3070_v30 }
 0x149   : > { %2444 = vmatprep.subr.mxu1 %v2590_v1 }
 0x14a   : > { %2445 = vmatpush3.msra.mxu1 %v3065_v29 }
 0x14b   : > { %2446 = vmatprep.subr.mxu1 %v2590_v1 }
 0x14c   : > { %2447 = vmatpush3.msra.mxu1 %v3063_v2  ;;  %v1261_v48 = vpop.f32.mrf.mxu0 }
 0x14d   : > { %2448 = vmatprep.subr.mxu1 %v2590_v1  ;;  %v1335_v11 = vsel %vm982_vm1, %v1261_v48, 0.0 }
 0x14e   : > { %2449 = vmatpush3.msra.mxu1 %v3061_v63  ;;  %v2435_v59 = vpop.f32.mrf.mxu0 }
 0x14f   : > { %2450 = vmatprep.subr.mxu1 %v2590_v1 }
 0x150   : > { %2451 = vmatpush3.msra.mxu1 %v3059_v62 }
 0x151   : > { %2453 = vmatmul.mubr.msk.f32.vlgmr.msra.gmra.mxu1 %vm1191_vm2, %v1190_v0 }
 0x152   : > { %2471 = vmatprep.mubr.msk.f32.mxu1 %vm1361_vm3, %v1351_v53 }
 0x201   : > { %v1158_v4 = vpop.f32.mrf.mxu1 }
 0x202   : > { %v3167_v50 = vadd.f32 %v1158_v4, %v1088_v49 }
 0x203   : > { %v2416_v18 = vpop.f32.mrf.mxu1 }
 0x204   : > { %1163 = vrot.lane.b32.xlu0 %v3167_v50, %s2592_s27 }
 0x211   : > { %v1331_v61 = vpop.f32.mrf.mxu1 }
 0x212   : > { %v1339_v1 = vsel %vm982_vm1, %v1331_v61, 0.0 }
 0x213   : > { %1340 = vadd.xlane.f32.xlu1 %v1339_v1  ;;  %v2454_v55 = vpop.f32.mrf.mxu1 }
 0x223   : > { %1336 = vadd.xlane.f32.xlu0 %v1335_v11 }
 0x276   : > { %v1164_v10 = vpop.permute.xlu0 %1163 }
 0x277   : > { %v1166_v13 = vmax.f32 %v3167_v50, %v1164_v10 }
 0x279   : > { %1171 = vrot.lane.b32.xlu1 %v1166_v13, %s2593_s28  ;;  %v1167_v42 = vsub.f32 %v3167_v50, %v1166_v13 }
 0x27b   : > { %v1168_v60 = vmul.f32 1.442695, %v1167_v42 }
 0x29c   : > { %v1341_v14 = vpop.xlane.xlu1 %1340 }
 0x29d   : > { %v1342_v9 = vmul.f32 0.125, %v1341_v14 }
 0x2ac   : > { %v1337_v15 = vpop.xlane.xlu0 %1336 }
 0x2ad   : > { %v1338_v16 = vmul.f32 0.125, %v1337_v15 }
 0x2af   : > { %v1343_v17 = vmax.f32 %v1338_v16, %v1342_v9 }
 0x2b1   : > { %v1344_v21 = vsub.f32 %v1338_v16, %v1343_v17  ;;  %v1347_v12 = vsub.f32 %v1342_v9, %v1343_v17 }
 0x2b3   : > { %v1345_v27 = vmul.f32 1.442695, %v1344_v21  ;;  %v1348_v47 = vmul.f32 1.442695, %v1347_v12 }
 0x2b5   : > { %2568 = vpow2.f32 %v1345_v27 }
 0x2b6   : > { %2570 = vpow2.f32 %v1348_v47 }
 0x2c2   : > { %v2569_v28 = vpop.eup %2568 }
 0x2c3   : > { %v2571_v31 = vpop.eup %2570 }
 0x2c4   : > { %v1350_v24 = vadd.f32 %v2571_v31, %v2569_v28 }
 0x2c6   : > { %2572 = vrcp.f32 %v1350_v24 }
 0x2d3   : > { %v2573_v34 = vpop.eup %2572 }
 0x2d4   : > { %v1491_v33 = vmul.f32 %v2573_v34, %v2571_v31  ;;  %v1360_v38 = vmul.f32 %v2573_v34, %v2569_v28 }
 0x2d6   : > { %2469 = vmatprep.subr.mxu1 %v1491_v33  ;;  %2455 = vmatprep.subr.mxu0 %v1360_v38 }
 0x2d7   : > { %2470 = vmatpush3.msra.mxu1 %v1491_v33  ;;  %2456 = vmatpush3.msra.mxu0 %v1360_v38 }
 0x2d8   : > { %2458 = vmatmul.mubr.msk.f32.vlgmr.msra.gmra.mxu0 %vm1361_vm3, %v1352_v41  ;;  %2472 = vmatmul.mubr.msk.f32.vlgmr.msra.gmra.mxu1 %vm1361_vm3, %v1352_v41 }
 0x2d9   : > { %2460 = vmatprep.mubr.msk.f32.mxu0 %vm1361_vm3, %v1353_v44  ;;  %2474 = vmatprep.mubr.msk.f32.mxu1 %vm1361_vm3, %v1353_v44 }
 0x2dc   : > { %2461 = vmatmul.mubr.msk.f32.gmra.mxu0 %vm1361_vm3, %v1354_v56  ;;  %2475 = vmatmul.mubr.msk.f32.gmra.mxu1 %vm1361_vm3, %v1354_v56 }
 0x2dd   : > { %2463 = vmatprep.mubr.msk.f32.mxu0 %vm1361_vm3, %v1355_v25  ;;  %2477 = vmatprep.mubr.msk.f32.mxu1 %vm1361_vm3, %v1355_v25 }
 0x2e0   : > { %2464 = vmatmul.mubr.msk.f32.gmra.mxu0 %vm1361_vm3, %v1356_v7  ;;  %2478 = vmatmul.mubr.msk.f32.gmra.mxu1 %vm1361_vm3, %v1356_v7 }
 0x2e1   : > { %2466 = vmatprep.mubr.msk.f32.mxu0 %vm1361_vm3, %v1357_v32  ;;  %2480 = vmatprep.mubr.msk.f32.mxu1 %vm1361_vm3, %v1357_v32 }
 0x2e4   : > { %2467 = vmatmul.mubr.msk.f32.gmra.mxu0 %vm1361_vm3, %v1358_v51  ;;  %2481 = vmatmul.mubr.msk.f32.gmra.mxu1 %vm1361_vm3, %v1358_v51 }
 0x2eb   : > { %v1172_v35 = vpop.permute.xlu1 %1171 }
 0x2ec   : > { %v1174_v52 = vsub.f32 %v3167_v50, %v1172_v35 }
 0x2ee   : > { %v1175_v36 = vmul.f32 1.442695, %v1174_v52 }
 0x2f0   : > { %2574 = vpow2.f32 %v1175_v36 }
 0x2f1   : > { %2576 = vpow2.f32 %v1168_v60  ;;  %v1597_v60 = vlaneseq }
 0x2fd   : > { %v3207_v54 = vpop.eup %2574 }
 0x2fe   : > { %1178 = vrot.lane.b32.xlu1 %v3207_v54, %s2592_s27  ;;  %v2577_v43 = vpop.eup %2576 }
 0x370   : > { %v1179_v0 = vpop.permute.xlu1 %1178 }
 0x371   : > { %v1181_v37 = vadd.f32 %v2577_v43, %v1179_v0 }
 0x373   : > { %2578 = vrcp.f32 %v1181_v37  ;;  %1185 = vrot.lane.b32.xlu1 %v1181_v37, %s2593_s28  ;;  %s2308_s28 = sshll.u32 %s3331_s22, 6 }
 0x374   : > { %s413_s16 = scalar_lea.vmem %s3329_s12, %s2308_s28 }
 0x380   : > { %v2579_v45 = vpop.eup %2578 }
 0x381   : > { %v3222_v58 = vmul.f32 %v2579_v45, %v2577_v43  ;;  %v1598_v43 = vshrl.u32 %v1597_v60, 7 }
 0x383   : > { %v1599_v45 = vsub.s32 0, %v1598_v43 }
 0x398   : > { %v2459_v46 = vpop.f32.mrf.mxu0  ;;  %v2473_v39 = vpop.f32.mrf.mxu1 }
 0x399   : > { %v1634_v53 = vmul.f32 %v2459_v46, %v2926_v20  ;;  %v1642_v41 = vmul.f32 %v2473_v39, %v3061_v63  ;;  %v1657_v39 = vld [vmem:[%s3326_s9] sm:$0xff] }
 0x39a   : > { %v1452_v48 = vpop.f32.mrf.mxu0  ;;  %v1558_v59 = vpop.f32.mrf.mxu1  ;;  %2521 = vmatprep.mubr.msk.f32.mxu1 %vm1191_vm2, %v1657_v39  ;;  %2499 = vmatprep.mubr.msk.f32.mxu0 %vm1191_vm2, %v1657_v39 }
 0x39b   : > { %v1633_v56 = vmul.f32 %v1452_v48, %v2924_v19  ;;  %v1641_v25 = vmul.f32 %v1558_v59, %v3059_v62  ;;  %v1650_v32 = vadd.f32 %v1642_v41, %v1634_v53  ;;  %v1658_v48 = vld [vmem:[%s3326_s9 + $0x8] sm:$0xff]  ;;  %v1660_v59 = vld [vmem:[%s3326_s9 + $0x18] sm:$0xff] }
 0x39c   : > { %v2462_v49 = vpop.f32.mrf.mxu0  ;;  %v2476_v4 = vpop.f32.mrf.mxu1 }
 0x39d   : > { %v1636_v24 = vmul.f32 %v2462_v49, %v2930_v57  ;;  %v1644_v34 = vmul.f32 %v2476_v4, %v3065_v29  ;;  %v1649_v51 = vadd.f32 %v1641_v25, %v1633_v56  ;;  %v1959_v49 = vld [vmem:[%s3327_s10 + $0x18] sm:$0xff]  ;;  %v1958_v4 = vld [vmem:[%s3327_s10 + $0x10] sm:$0xff] }
 0x39e   : > { %v1462_v18 = vpop.f32.mrf.mxu0  ;;  %v1568_v61 = vpop.f32.mrf.mxu1 }
 0x39f   : > { %v1635_v35 = vmul.f32 %v1462_v18, %v2928_v8  ;;  %v1643_v52 = vmul.f32 %v1568_v61, %v3063_v2  ;;  %v1652_v44 = vadd.f32 %v1644_v34, %v1636_v24  ;;  %v1957_v18 = vld [vmem:[%s3327_s10 + $0x8] sm:$0xff]  ;;  %v1956_v61 = vld [vmem:[%s3327_s10] sm:$0xff] }
 0x3a0   : > { %v2465_v50 = vpop.f32.mrf.mxu0  ;;  %v2479_v1 = vpop.f32.mrf.mxu1  ;;  %v2297_v24 = vld [vmem:[%s3328_s11] ss:$0 sm:$0xff] }
 0x3a1   : > { %v1638_v14 = vmul.f32 %v2465_v50, %v3068_v3  ;;  %v1646_v9 = vmul.f32 %v2479_v1, %v3072_v40  ;;  %v1651_v7 = vadd.f32 %v1643_v52, %v1635_v35  ;;  %v1600_v50 = vrot.slane %v3222_v58, %v1599_v45 }
 0x3a2   : > { %v1472_v55 = vpop.f32.mrf.mxu0  ;;  %v1578_v11 = vpop.f32.mrf.mxu1 }
 0x3a3   : > { %v1637_v17 = vmul.f32 %v1472_v55, %v3057_v5  ;;  %v1645_v27 = vmul.f32 %v1578_v11, %v3070_v30  ;;  %v1654_v33 = vadd.f32 %v1646_v9, %v1638_v14  ;;  %v1608_v55 = vmul.f32 %v1600_v50, %v3093_v22 }
 0x3a4   : > { %v2468_v10 = vpop.f32.mrf.mxu0  ;;  %v2482_v13 = vpop.f32.mrf.mxu1  ;;  %v1607_v14 = vmul.f32 %v1600_v50, %v3083_v26 }
 0x3a5   : > { %v1640_v15 = vmul.f32 %v2468_v10, %v3093_v22  ;;  %v1648_v16 = vmul.f32 %v2482_v13, %v3095_v23  ;;  %v1653_v36 = vadd.f32 %v1645_v27, %v1637_v17  ;;  %v1605_v22 = vmul.f32 %v1600_v50, %v3057_v5 }
 0x3a6   : > { %v1482_v21 = vpop.f32.mrf.mxu0  ;;  %v1588_v12 = vpop.f32.mrf.mxu1  ;;  %v1602_v5 = vmul.f32 %v1600_v50, %v2926_v20 }
 0x3a7   : > { %v1656_v47 = vadd.f32 %v1648_v16, %v1640_v15  ;;  %v1639_v28 = vmul.f32 %v1482_v21, %v3083_v26  ;;  %v1647_v31 = vmul.f32 %v1588_v12, %v3085_v6  ;;  %v1606_v16 = vmul.f32 %v1600_v50, %v3068_v3 }
 0x3a8   : > { %v1604_v26 = vmul.f32 %v1600_v50, %v2930_v57  ;;  %v1603_v3 = vmul.f32 %v1600_v50, %v2928_v8  ;;  %v1601_v57 = vmul.f32 %v1600_v50, %v2924_v19 }
 0x3a9   : > { %v1655_v38 = vadd.f32 %v1647_v31, %v1639_v28  ;;  %2505 = vmatprep.subr.mxu1 %v1656_v47 }
 0x3aa   : > { %2506 = vmatpush3.msra.mxu1 %v1656_v47 }
 0x3ab   : > { %2507 = vmatprep.subr.mxu1 %v1655_v38 }
 0x3ac   : > { %2508 = vmatpush3.msra.mxu1 %v1655_v38 }
 0x3ad   : > { %2509 = vmatprep.subr.mxu1 %v1654_v33 }
 0x3ae   : > { %2510 = vmatpush3.msra.mxu1 %v1654_v33 }
 0x3af   : > { %2511 = vmatprep.subr.mxu1 %v1653_v36 }
 0x3b0   : > { %2512 = vmatpush3.msra.mxu1 %v1653_v36 }
 0x3b1   : > { %2513 = vmatprep.subr.mxu1 %v1652_v44 }
 0x3b2   : > { %2514 = vmatpush3.msra.mxu1 %v1652_v44 }
 0x3b3   : > { %2515 = vmatprep.subr.mxu1 %v1651_v7 }
 0x3b4   : > { %2516 = vmatpush3.msra.mxu1 %v1651_v7 }
 0x3b5   : > { %2517 = vmatprep.subr.mxu1 %v1650_v32 }
 0x3b6   : > { %2518 = vmatpush3.msra.mxu1 %v1650_v32 }
 0x3b7   : > { %2519 = vmatprep.subr.mxu1 %v1649_v51 }
 0x3b8   : > { %2520 = vmatpush3.msra.mxu1 %v1649_v51 }
 0x3b9   : > { %2522 = vmatmul.mubr.msk.f32.vlgmr.msra.gmra.mxu1 %vm1191_vm2, %v1658_v48  ;;  %2541 = vmatprep.subr.mxu1 %v1959_v49 }
 0x3ba   : > { %2542 = vmatpush3.msra.mxu1 %v1959_v49 }
 0x3bb   : > { %2543 = vmatprep.subr.mxu1 %v1958_v4 }
 0x3bc   : > { %2544 = vmatpush3.msra.mxu1 %v1958_v4 }
 0x3bd   : > { %2545 = vmatprep.subr.mxu1 %v1957_v18 }
 0x3be   : > { %2546 = vmatpush3.msra.mxu1 %v1957_v18 }
 0x3bf   : > { %2547 = vmatprep.subr.mxu1 %v1956_v61 }
 0x3c0   : > { %2548 = vmatpush3.msra.mxu1 %v1956_v61 }
 0x3e5   : > { %v1186_v42 = vpop.permute.xlu1 %1185 }
 0x3e6   : > { %2580 = vrcp.f32 %v1186_v42 }
 0x3f3   : > { %v2581_v0 = vpop.eup %2580 }
 0x3f4   : > { %v1189_v37 = vmul.f32 %v2581_v0, %v3207_v54  ;;  %v1659_v54 = vld [vmem:[%s3326_s9 + $0x10] sm:$0xff] }
 0x3f5   : > { %2524 = vmatprep.mubr.msk.f32.mxu1 %vm1191_vm2, %v1659_v54 }
 0x3f6   : > { %v1612_v46 = vrot.slane %v1189_v37, %v1599_v45  ;;  %2525 = vmatmul.mubr.msk.f32.gmra.mxu1 %vm1191_vm2, %v1660_v59 }
 0x3f8   : > { %1614 = vrot.lane.b32.xlu1 %v1612_v46, %s2592_s27 }
 0x46a   : > { %v1615_v1 = vpop.permute.xlu1 %1614 }
 0x46b   : > { %v1624_v11 = vmul.f32 %v1615_v1, %v3095_v23  ;;  %v1623_v10 = vmul.f32 %v1615_v1, %v3085_v6  ;;  %v1622_v9 = vmul.f32 %v1615_v1, %v3072_v40  ;;  %v1621_v17 = vmul.f32 %v1615_v1, %v3070_v30 }
 0x46c   : > { %v1620_v23 = vmul.f32 %v1615_v1, %v3065_v29  ;;  %v1619_v40 = vmul.f32 %v1615_v1, %v3063_v2  ;;  %v1618_v30 = vmul.f32 %v1615_v1, %v3061_v63  ;;  %v1617_v29 = vmul.f32 %v1615_v1, %v3059_v62 }
 0x46d   : > { %v1632_v13 = vadd.f32 %v1624_v11, %v1608_v55  ;;  %v1631_v15 = vadd.f32 %v1623_v10, %v1607_v14  ;;  %v1630_v58 = vadd.f32 %v1622_v9, %v1606_v16  ;;  %v1629_v6 = vadd.f32 %v1621_v17, %v1605_v22 }
 0x46e   : > { %v1628_v21 = vadd.f32 %v1620_v23, %v1604_v26  ;;  %v1627_v12 = vadd.f32 %v1619_v40, %v1603_v3  ;;  %v1626_v27 = vadd.f32 %v1618_v30, %v1602_v5  ;;  %v1625_v2 = vadd.f32 %v1617_v29, %v1601_v57 }
 0x46f   : > { %2483 = vmatprep.subr.mxu0 %v1632_v13 }
 0x470   : > { %2484 = vmatpush3.msra.mxu0 %v1632_v13 }
 0x471   : > { %2485 = vmatprep.subr.mxu0 %v1631_v15 }
 0x472   : > { %2486 = vmatpush3.msra.mxu0 %v1631_v15 }
 0x473   : > { %2487 = vmatprep.subr.mxu0 %v1630_v58 }
 0x474   : > { %2488 = vmatpush3.msra.mxu0 %v1630_v58 }
 0x475   : > { %2489 = vmatprep.subr.mxu0 %v1629_v6 }
 0x476   : > { %2490 = vmatpush3.msra.mxu0 %v1629_v6 }
 0x477   : > { %2491 = vmatprep.subr.mxu0 %v1628_v21 }
 0x478   : > { %2492 = vmatpush3.msra.mxu0 %v1628_v21 }
 0x479   : > { %2493 = vmatprep.subr.mxu0 %v1627_v12  ;;  %v2523_v19 = vpop.f32.mrf.mxu1 }
 0x47a   : > { %2494 = vmatpush3.msra.mxu0 %v1627_v12 }
 0x47b   : > { %2495 = vmatprep.subr.mxu0 %v1626_v27  ;;  %v1824_v20 = vpop.f32.mrf.mxu1 }
 0x47c   : > { %2496 = vmatpush3.msra.mxu0 %v1626_v27  ;;  %2549 = vmatprep.mubr.msk.f32.mxu1 %vm982_vm1, %v1824_v20 }
 0x47d   : > { %2497 = vmatprep.subr.mxu0 %v1625_v2  ;;  %2550 = vmatmul.mubr.msk.f32.vlgmr.msra.gmra.mxu1 %vm982_vm1, %v2523_v19 }
 0x47e   : > { %2498 = vmatpush3.msra.mxu0 %v1625_v2 }
 0x47f   : > { %2500 = vmatmul.mubr.msk.f32.vlgmr.msra.gmra.mxu0 %vm1191_vm2, %v1658_v48  ;;  %2527 = vmatprep.subr.mxu0 %v1959_v49 }
 0x480   : > { %2502 = vmatprep.mubr.msk.f32.mxu0 %vm1191_vm2, %v1659_v54  ;;  %2528 = vmatpush3.msra.mxu0 %v1959_v49 }
 0x481   : > { %2529 = vmatprep.subr.mxu0 %v1958_v4 }
 0x482   : > { %2530 = vmatpush3.msra.mxu0 %v1958_v4 }
 0x483   : > { %2503 = vmatmul.mubr.msk.f32.gmra.mxu0 %vm1191_vm2, %v1660_v59  ;;  %2531 = vmatprep.subr.mxu0 %v1957_v18 }
 0x484   : > { %2532 = vmatpush3.msra.mxu0 %v1957_v18 }
 0x485   : > { %2533 = vmatprep.subr.mxu0 %v1956_v61 }
 0x486   : > { %2534 = vmatpush3.msra.mxu0 %v1956_v61 }
 0x4b6   : > { %v2526_v8 = vpop.f32.mrf.mxu1 }
 0x4b8   : > { %v1834_v62 = vpop.f32.mrf.mxu1 }
 0x4b9   : > { %2552 = vmatprep.mubr.msk.f32.mxu1 %vm982_vm1, %v1834_v62 }
 0x4ba   : > { %2553 = vmatmul.mubr.msk.f32.gmra.mxu1 %vm982_vm1, %v2526_v8 }
 0x53d   : > { %v2551_v34 = vpop.f32.mrf.mxu1 }
 0x53e   : > { %v2051_v33 = vadd.f32 %v2551_v34, %v2297_v24 }
 0x53f   : > { %v2501_v63 = vpop.f32.mrf.mxu0  ;;  %v2045_v38 = vpop.f32.mrf.mxu1 }
 0x540   : > { %2303 = vst.msk [vmem:[%s413_s16 + $0x28] sm:$0xff] %vm1951_vm4, %v2051_v33  ;;  %v2046_v35 = vadd.f32 %v2297_v24, %v2045_v38 }
 0x541   : > { %v1739_v47 = vpop.f32.mrf.mxu0 }
 0x542   : > { %2535 = vmatprep.mubr.msk.f32.mxu0 %vm982_vm1, %v1739_v47  ;;  %2302 = vst.msk [vmem:[%s413_s16 + $0x20] sm:$0xff] %vm1951_vm4, %v2046_v35 }
 0x543   : > { %v2504_v28 = vpop.f32.mrf.mxu0  ;;  %2536 = vmatmul.mubr.msk.f32.vlgmr.msra.gmra.mxu0 %vm982_vm1, %v2501_v63 }
 0x545   : > { %v1749_v31 = vpop.f32.mrf.mxu0 }
 0x546   : > { %2538 = vmatprep.mubr.msk.f32.mxu0 %vm982_vm1, %v1749_v31 }
 0x547   : > { %2539 = vmatmul.mubr.msk.f32.gmra.mxu0 %vm982_vm1, %v2504_v28 }
 0x57a   : > { %v2554_v52 = vpop.f32.mrf.mxu1 }
 0x57b   : > { %v2061_v53 = vadd.f32 %v2554_v52, %v2297_v24 }
 0x57c   : > { %v2055_v36 = vpop.f32.mrf.mxu1 }
 0x57d   : > { %v2056_v41 = vadd.f32 %v2297_v24, %v2055_v36  ;;  %2305 = vst.msk [vmem:[%s413_s16 + $0x38] sm:$0xff] %vm1951_vm4, %v2061_v53 }
 0x57f   : > { %2304 = vst.msk [vmem:[%s413_s16 + $0x30] sm:$0xff] %vm1951_vm4, %v2056_v41 }
 0x603   : > { %v2537_v44 = vpop.f32.mrf.mxu0 }
 0x604   : > { %v1938_v56 = vadd.f32 %v2537_v44, %v2297_v24 }
 0x605   : > { %v1932_v25 = vpop.f32.mrf.mxu0 }
 0x606   : > { %1953 = vst.msk [vmem:[%s413_s16 + $0x8] sm:$0xff] %vm1951_vm4, %v1938_v56  ;;  %v1933_v7 = vadd.f32 %v2297_v24, %v1932_v25 }
 0x607   : > { %v2540_v32 = vpop.f32.mrf.mxu0 }
 0x608   : > { %1952 = vst.msk [vmem:[%s413_s16] sm:$0xff] %vm1951_vm4, %v1933_v7  ;;  %v1948_v51 = vadd.f32 %v2540_v32, %v2297_v24 }
 0x609   : > { %v1942_v42 = vpop.f32.mrf.mxu0 }
 0x60a   : > { %1955 = vst.msk [vmem:[%s413_s16 + $0x18] sm:$0xff] %vm1951_vm4, %v1948_v51  ;;  %v1943_v60 = vadd.f32 %v2297_v24, %v1942_v42 }
 0x60c   : > { %1954 = vst.msk [vmem:[%s413_s16 + $0x10] sm:$0xff] %vm1951_vm4, %v1943_v60 }
 0x60d PF: > { %s22_s21 = sadd.s32 1, %s2588_s21  }
 0x60e   : > { %p19_p4 = scmp.ge.s32.totalorder %s22_s21, 4  }
 0x610   :  { %21 = sbr.rel (!%p19_p4) target bundleno = 1 (0x1), region = 103 }

</bundles_post_ra>
